<compile_context>
chip_gen: v6e
topology: v6e:2x2x1
jax: 0.10.0
libtpu: 0.0.40
codegen_flags: <defaults>
</compile_context>

<pallas_src>
import math
from functools import partial

import jax
import jax.numpy as jnp
from jax.experimental import pallas as pl
from jax.experimental.pallas import tpu as pltpu

KSIZE = 7          # depthwise kernel size
PAD = 3            # conv padding (kernel_size // 2)
HALO = 4           # wrapper-side halo per tile (>= PAD, multiple-of-8 friendly: TILE_T + 2*HALO)
EPS = 1e-6
_INV_SQRT2 = 1.0 / math.sqrt(2.0)


def _gelu_exact(x):
    # exact (erf) GELU, matching torch.nn.GELU()
    return 0.5 * x * (1.0 + jax.lax.erf(x * jnp.float32(_INV_SQRT2)))


# ---------------------------------------------------------------------------
# Block1 kernel: masked depthwise conv -> LayerNorm -> MLP(4x, GELU) -> gamma -> +residual
# ---------------------------------------------------------------------------
def block1_kernel(lens_ref,                                   # scalar prefetch: (B,) int32 valid lengths
                  xw_ref,                                     # (1, 1, TILE_T + 2*HALO, C) f32 halo'd window
                  dww_ref, dwb_ref,                           # (7, C) f32, (1, C) f32
                  lnw_ref, lnb_ref,                           # (1, C) f32
                  w1_ref, b1_ref,                             # (C, H) bf16, (1, H) f32
                  w2_ref, b2_ref,                             # (H, C) bf16, (1, C) f32
                  gamma_ref,                                  # (1, C) f32
                  out_ref,                                    # (1, TILE_T, C) f32
                  *, h_chunk):
    xp = xw_ref[0, 0]                                         # (TILE_T + 2*HALO, C)
    tile_t = xp.shape[0] - 2 * HALO
    C = xp.shape[1]
    x0 = xp[HALO:HALO + tile_t, :]                            # residual path (original rows of this tile)

    # --- depthwise conv1d, k=7, pad=3, groups=C:  out[i] = b + sum_k w[k] * x[i + k - 3] ---
    acc = jnp.zeros((tile_t, C), jnp.float32) + dwb_ref[...]
    for k in range(KSIZE):                                    # static unroll (7 taps)
        s = (HALO - PAD) + k                                  # offsets 1..7 into the halo'd tile
        acc = acc + xp[s:s + tile_t, :] * dww_ref[k, :]

    # --- MaskedConv1D: zero invalid time steps (prefix mask rebuilt from scalar-prefetched lens) ---
    t0 = pl.program_id(1) * tile_t
    rows = jax.lax.broadcasted_iota(jnp.int32, (tile_t, C), 0)
    valid = (rows + t0) < lens_ref[pl.program_id(0)]
    y = jnp.where(valid, acc, 0.0)

    # --- LayerNorm over channels (eps=1e-6, biased variance) ---
    u = jnp.mean(y, axis=-1, keepdims=True)
    d = y - u
    v = jnp.mean(d * d, axis=-1, keepdims=True)
    xn = d * jax.lax.rsqrt(v + EPS) * lnw_ref[...] + lnb_ref[...]

    # --- MLP fused over the hidden dim: never materialize the (TILE_T, 4C) intermediate ---
    xb = xn.astype(jnp.bfloat16)                              # bf16 MXU operands, f32 accumulation
    H = w1_ref.shape[1]
    nh = H // h_chunk
    z = jnp.zeros((tile_t, C), jnp.float32)
    for j in range(nh):                                       # static unroll over H chunks
        lo = j * h_chunk
        hi = lo + h_chunk
        h = jnp.dot(xb, w1_ref[:, lo:hi],
                    preferred_element_type=jnp.float32) + b1_ref[:, lo:hi]
        h = _gelu_exact(h)
        z = z + jnp.dot(h.astype(jnp.bfloat16), w2_ref[lo:hi, :],
                        preferred_element_type=jnp.float32)
    z = z + b2_ref[...]

    # --- layer scale + residual ---
    out_ref[0] = x0 + gamma_ref[...] * z


# ---------------------------------------------------------------------------
# Downsample kernel: (block_out + identity) -> channels_first LayerNorm -> 1x1 MaskedConv1D
# ---------------------------------------------------------------------------
def downsample_kernel(lens_ref,                               # scalar prefetch: (B,) int32
                      y_ref, x_ref,                           # (1, TILE_T, Cin) f32 each
                      lnw_ref, lnb_ref,                       # (1, Cin) f32
                      w_ref, b_ref,                           # (Cin, Cout) bf16, (1, Cout) f32
                      out_ref):                               # (1, TILE_T, Cout) f32
    s = y_ref[0] + x_ref[0]                                   # extra stage residual, fused
    tile_t = s.shape[0]

    u = jnp.mean(s, axis=-1, keepdims=True)
    d = s - u
    v = jnp.mean(d * d, axis=-1, keepdims=True)
    xn = d * jax.lax.rsqrt(v + EPS) * lnw_ref[...] + lnb_ref[...]

    h = jnp.dot(xn.astype(jnp.bfloat16), w_ref[...],
                preferred_element_type=jnp.float32) + b_ref[...]

    t0 = pl.program_id(1) * tile_t
    rows = jax.lax.broadcasted_iota(jnp.int32, h.shape, 0)
    valid = (rows + t0) < lens_ref[pl.program_id(0)]
    out_ref[0] = jnp.where(valid, h, 0.0)


# ---------------------------------------------------------------------------
# Tiling / VMEM helpers
# ---------------------------------------------------------------------------
def _choose_tile_t(T, target=256):
    # largest divisor of T that is a multiple of 8 and <= target (falls back to T)
    for c in range(min(T, target), 0, -1):
        if T % c == 0 and c % 8 == 0:
            return c
    return T


def _choose_h_chunk(H, target=512):
    for c in range(min(H, target), 0, -1):
        if H % c == 0 and c % 128 == 0:
            return c
    return H


def _compiler_params(est_bytes):
    limit = int(min(max(2 * est_bytes, 32 * 1024 * 1024), 100 * 1024 * 1024))
    return pltpu.CompilerParams(
        dimension_semantics=("parallel", "parallel"),
        vmem_limit_bytes=limit,
    )


def _block1_vmem_est(tile_t, C, H, hc):
    f32, b16 = 4, 2
    tiles = 2 * ((tile_t + 2 * HALO) * C + tile_t * C) * f32          # double-buffered in/out tiles
    wts = 2 * (KSIZE * C * f32 + 5 * C * f32 + H * f32 + 2 * C * H * b16)
    live = (6 * tile_t * C + 3 * tile_t * hc) * f32
    return tiles + wts + live


def _down_vmem_est(tile_t, cin, cout):
    f32, b16 = 4, 2
    tiles = 2 * (2 * tile_t * cin + tile_t * cout) * f32
    wts = 2 * (2 * cin * f32 + cout * f32 + cin * cout * b16)
    live = (5 * tile_t * cin + 2 * tile_t * cout) * f32
    return tiles + wts + live


# ---------------------------------------------------------------------------
# Pallas wrappers (all channels-last (B, T, C))
# ---------------------------------------------------------------------------
def block1_apply(x_btc, lens, p, *, tile_t=None, h_chunk=None):
    B, T, C = x_btc.shape
    H = p["w1"].shape[1]
    if tile_t is None:
        tile_t = _choose_tile_t(T)
    if h_chunk is None:
        h_chunk = _choose_h_chunk(H)
    assert T % tile_t == 0 and H % h_chunk == 0
    nt = T // tile_t

    # halo'd windows (single activation stream into the kernel; residual derived in-kernel)
    xpad = jnp.pad(x_btc, ((0, 0), (HALO, HALO), (0, 0)))
    idx = jnp.arange(nt, dtype=jnp.int32)[:, None] * tile_t + \
        jnp.arange(tile_t + 2 * HALO, dtype=jnp.int32)[None, :]
    xw = xpad[:, idx, :]                                              # (B, nt, tile_t + 2*HALO, C)

    kern = partial(block1_kernel, h_chunk=h_chunk)
    return pl.pallas_call(
        kern,
        out_shape=jax.ShapeDtypeStruct((B, T, C), jnp.float32),
        grid_spec=pltpu.PrefetchScalarGridSpec(
            num_scalar_prefetch=1,
            grid=(B, nt),
            in_specs=[
                pl.BlockSpec((1, 1, tile_t + 2 * HALO, C), lambda b, t, L: (b, t, 0, 0)),
                pl.BlockSpec((KSIZE, C), lambda b, t, L: (0, 0)),     # dw weight
                pl.BlockSpec((1, C), lambda b, t, L: (0, 0)),         # dw bias
                pl.BlockSpec((1, C), lambda b, t, L: (0, 0)),         # ln weight
                pl.BlockSpec((1, C), lambda b, t, L: (0, 0)),         # ln bias
                pl.BlockSpec((C, H), lambda b, t, L: (0, 0)),         # pwconv1 W^T (bf16)
                pl.BlockSpec((1, H), lambda b, t, L: (0, 0)),         # pwconv1 b
                pl.BlockSpec((H, C), lambda b, t, L: (0, 0)),         # pwconv2 W^T (bf16)
                pl.BlockSpec((1, C), lambda b, t, L: (0, 0)),         # pwconv2 b
                pl.BlockSpec((1, C), lambda b, t, L: (0, 0)),         # gamma
            ],
            out_specs=pl.BlockSpec((1, tile_t, C), lambda b, t, L: (b, t, 0)),
        ),
        compiler_params=_compiler_params(_block1_vmem_est(tile_t, C, H, h_chunk)),
    )(lens, xw, p["dww"], p["dwb"], p["lnw"], p["lnb"],
      p["w1"], p["b1"], p["w2"], p["b2"], p["gamma"])


def downsample_apply(y_btc, x_btc, lens, p, *, tile_t=None):
    B, T, Cin = y_btc.shape
    Cout = p["w"].shape[1]
    if tile_t is None:
        tile_t = _choose_tile_t(T)
    assert T % tile_t == 0
    nt = T // tile_t

    return pl.pallas_call(
        downsample_kernel,
        out_shape=jax.ShapeDtypeStruct((B, T, Cout), jnp.float32),
        grid_spec=pltpu.PrefetchScalarGridSpec(
            num_scalar_prefetch=1,
            grid=(B, nt),
            in_specs=[
                pl.BlockSpec((1, tile_t, Cin), lambda b, t, L: (b, t, 0)),   # block output
                pl.BlockSpec((1, tile_t, Cin), lambda b, t, L: (b, t, 0)),   # identity
                pl.BlockSpec((1, Cin), lambda b, t, L: (0, 0)),
                pl.BlockSpec((1, Cin), lambda b, t, L: (0, 0)),
                pl.BlockSpec((Cin, Cout), lambda b, t, L: (0, 0)),
                pl.BlockSpec((1, Cout), lambda b, t, L: (0, 0)),
            ],
            out_specs=pl.BlockSpec((1, tile_t, Cout), lambda b, t, L: (b, t, 0)),
        ),
        compiler_params=_compiler_params(_down_vmem_est(tile_t, Cin, Cout)),
    )(lens, y_btc, x_btc, p["lnw"], p["lnb"], p["w"], p["b"])


def convnext_forward(x_nct, mask, stage_params, down_params, *, tile_t=None, h_chunk=None):
    """ConvNeXt.forward.  x_nct: (B, C, T) f32, mask: (B, 1, T) bool (valid-prefix mask).
    Returns (out (B, C, T) f32, mask)."""
    B, C, T = x_nct.shape
    assert mask.shape == (B, 1, T)
    assert stage_params[0]["dww"].shape[1] == stage_params[-1]["gamma"].shape[1] == C

    x = jnp.transpose(x_nct, (0, 2, 1)).astype(jnp.float32)           # single NCT -> BTC transpose
    lens = jnp.sum(mask[:, 0, :].astype(jnp.int32), axis=-1)          # per-batch valid lengths (prefix mask)

    outer_identity = x
    src = x
    n_stages = len(stage_params)
    for i in range(n_stages - 1):
        y = block1_apply(src, lens, stage_params[i], tile_t=tile_t, h_chunk=h_chunk)
        # fused: src = (y + identity) -> channels_first LN -> 1x1 MaskedConv1D -> * mask
        src = downsample_apply(y, src, lens, down_params[i], tile_t=tile_t)
    src = block1_apply(src, lens, stage_params[-1], tile_t=tile_t, h_chunk=h_chunk)
    src = src + outer_identity                                        # outer ConvNeXt residual

    return jnp.transpose(src, (0, 2, 1)), mask


# ---------------------------------------------------------------------------
# Parameter init (deterministic; mirrors torch init: trunc_normal(0.02)-ish weights, zero biases)
# ---------------------------------------------------------------------------
def init_block1_params(key, dim, layer_scale_init_value=1e-6):
    H = 4 * dim
    k1, k2, k3 = jax.random.split(key, 3)
    return {
        "dww": 0.02 * jax.random.normal(k1, (KSIZE, dim), jnp.float32),   # torch (dim,1,7) -> (7,dim)
        "dwb": jnp.zeros((1, dim), jnp.float32),
        "lnw": jnp.ones((1, dim), jnp.float32),
        "lnb": jnp.zeros((1, dim), jnp.float32),
        "w1": (0.02 * jax.random.normal(k2, (dim, H), jnp.float32)).astype(jnp.bfloat16),
        "b1": jnp.zeros((1, H), jnp.float32),
        "w2": (0.02 * jax.random.normal(k3, (H, dim), jnp.float32)).astype(jnp.bfloat16),
        "b2": jnp.zeros((1, dim), jnp.float32),
        "gamma": layer_scale_init_value * jnp.ones((1, dim), jnp.float32),
    }


def init_downsample_params(key, cin, cout):
    return {
        "lnw": jnp.ones((1, cin), jnp.float32),
        "lnb": jnp.zeros((1, cin), jnp.float32),
        "w": (0.02 * jax.random.normal(key, (cin, cout), jnp.float32)).astype(jnp.bfloat16),
        "b": jnp.zeros((1, cout), jnp.float32),
    }


def init_convnext_params(key, dims, layer_scale_init_value=1e-6):
    keys = jax.random.split(key, 2 * len(dims))
    stage_ps = [init_block1_params(keys[i], dims[i], layer_scale_init_value)
                for i in range(len(dims))]
    down_ps = [init_downsample_params(keys[len(dims) + i], dims[i], dims[i + 1])
               for i in range(len(dims) - 1)]
    return stage_ps, down_ps


# ---------------------------------------------------------------------------
# Pure-JAX f32 reference (for a numerical sanity check against the kernels)
# ---------------------------------------------------------------------------
def _mask_btc(lens, T):
    return jnp.arange(T)[None, :, None] < lens[:, None, None]


def _block1_ref(x, lens, p):
    B, T, C = x.shape
    xpad = jnp.pad(x, ((0, 0), (PAD, PAD), (0, 0)))
    y = jnp.zeros_like(x) + p["dwb"]
    for k in range(KSIZE):
        y = y + xpad[:, k:k + T, :] * p["dww"][k][None, None, :]
    y = jnp.where(_mask_btc(lens, T), y, 0.0)
    u = jnp.mean(y, -1, keepdims=True)
    d = y - u
    v = jnp.mean(d * d, -1, keepdims=True)
    xn = d * jax.lax.rsqrt(v + EPS) * p["lnw"] + p["lnb"]
    h = xn @ p["w1"].astype(jnp.float32) + p["b1"]
    h = _gelu_exact(h)
    z = h @ p["w2"].astype(jnp.float32) + p["b2"]
    return x + p["gamma"] * z


def _downsample_ref(y, x, lens, p):
    s = y + x
    u = jnp.mean(s, -1, keepdims=True)
    d = s - u
    v = jnp.mean(d * d, -1, keepdims=True)
    xn = d * jax.lax.rsqrt(v + EPS) * p["lnw"] + p["lnb"]
    h = xn @ p["w"].astype(jnp.float32) + p["b"]
    return jnp.where(_mask_btc(lens, h.shape[1]), h, 0.0)


def convnext_ref(x_nct, mask, stage_ps, down_ps):
    x = jnp.transpose(x_nct, (0, 2, 1)).astype(jnp.float32)
    lens = jnp.sum(mask[:, 0, :].astype(jnp.int32), axis=-1)
    outer = x
    src = x
    for i in range(len(stage_ps) - 1):
        y = _block1_ref(src, lens, stage_ps[i])
        src = _downsample_ref(y, src, lens, down_ps[i])
    src = _block1_ref(src, lens, stage_ps[-1])
    src = src + outer
    return jnp.transpose(src, (0, 2, 1)), mask


# ---------------------------------------------------------------------------
if __name__ == "__main__":
    # Small deterministic example (ConvNeXt defaults are dims=(512,512,512), depths=(2,6,2);
    # depths only affect drop-path rates, which are 0 here).
    B, T = 2, 64
    dims = (128, 128, 128)
    TILE_T = 32        # exercises T-tiling + halo across a tile boundary
    H_CHUNK = 256      # exercises the fused H-chunked MLP (H = 512 -> 2 chunks)

    key = jax.random.PRNGKey(0)
    kx, kp = jax.random.split(key)
    x = jax.random.normal(kx, (B, dims[0], T), jnp.float32)            # NCT, like PyTorch
    valid = jnp.array([T, T // 2], dtype=jnp.int32)                    # valid-prefix mask
    mask = jnp.arange(T)[None, None, :] < valid[:, None, None]         # (B, 1, T) bool

    stage_ps, down_ps = init_convnext_params(kp, dims)

    fwd = jax.jit(partial(convnext_forward, tile_t=TILE_T, h_chunk=H_CHUNK))
    out, out_mask = fwd(x, mask, stage_ps, down_ps)
    jax.block_until_ready(out)
    jax.block_until_ready(out_mask)

    # sanity check vs. pure-JAX f32 reference (kernels use bf16 MXU operands -> small drift)
    ref, _ = convnext_ref(x, mask, stage_ps, down_ps)
    err = float(jnp.max(jnp.abs(out - ref)))

    assert out.shape == (B, dims[-1], T) and out.dtype == jnp.float32
    assert out_mask.shape == (B, 1, T) and out_mask.dtype == jnp.bool_
    assert err < 3e-2, f"max abs err vs reference: {err}"
    print("KERNEL_OK")
</pallas_src>

<mosaic_0001>
module attributes {stable_mosaic.version = 11 : i64} {
  func.func @block1_kernel(%arg0: i32, %arg1: i32, %arg2: memref<2xi32, #tpu.memory_space<smem>>, %arg3: memref<1x1x40x128xf32, #tpu.memory_space<vmem>>, %arg4: memref<7x128xf32, #tpu.memory_space<vmem>>, %arg5: memref<1x128xf32, #tpu.memory_space<vmem>>, %arg6: memref<1x128xf32, #tpu.memory_space<vmem>>, %arg7: memref<1x128xf32, #tpu.memory_space<vmem>>, %arg8: memref<128x512xbf16, #tpu.memory_space<vmem>>, %arg9: memref<1x512xf32, #tpu.memory_space<vmem>>, %arg10: memref<512x128xbf16, #tpu.memory_space<vmem>>, %arg11: memref<1x128xf32, #tpu.memory_space<vmem>>, %arg12: memref<1x128xf32, #tpu.memory_space<vmem>>, %arg13: memref<1x32x128xf32, #tpu.memory_space<vmem>>) attributes {dimension_semantics = [#tpu.dimension_semantics<parallel>, #tpu.dimension_semantics<parallel>], iteration_bounds = array<i64: 2, 2>, scalar_prefetch = 1 : i64, scratch_operands = 0 : i64, tpu.core_type = #tpu.core_type<tc>, window_params = [{transform_indices = @transform_0, window_bounds = array<i64: 1, 1, 40, 128>}, {pipeline_mode = #tpu.pipeline_mode<synchronous>, transform_indices = @transform_1, window_bounds = array<i64: 7, 128>}, {pipeline_mode = #tpu.pipeline_mode<synchronous>, transform_indices = @transform_2, window_bounds = array<i64: 1, 128>}, {pipeline_mode = #tpu.pipeline_mode<synchronous>, transform_indices = @transform_3, window_bounds = array<i64: 1, 128>}, {pipeline_mode = #tpu.pipeline_mode<synchronous>, transform_indices = @transform_4, window_bounds = array<i64: 1, 128>}, {pipeline_mode = #tpu.pipeline_mode<synchronous>, transform_indices = @transform_5, window_bounds = array<i64: 128, 512>}, {pipeline_mode = #tpu.pipeline_mode<synchronous>, transform_indices = @transform_6, window_bounds = array<i64: 1, 512>}, {pipeline_mode = #tpu.pipeline_mode<synchronous>, transform_indices = @transform_7, window_bounds = array<i64: 512, 128>}, {pipeline_mode = #tpu.pipeline_mode<synchronous>, transform_indices = @transform_8, window_bounds = array<i64: 1, 128>}, {pipeline_mode = #tpu.pipeline_mode<synchronous>, transform_indices = @transform_9, window_bounds = array<i64: 1, 128>}, {transform_indices = @transform_10, window_bounds = array<i64: 1, 32, 128>}]} {
    %c0 = arith.constant 0 : index
    %c0_0 = arith.constant 0 : index
    %c0_1 = arith.constant 0 : index
    %c0_2 = arith.constant 0 : index
    %0 = vector.load %arg3[%c0, %c0_0, %c0_1, %c0_2] : memref<1x1x40x128xf32, #tpu.memory_space<vmem>>, vector<1x1x40x128xf32>
    %1 = vector.shape_cast %0 : vector<1x1x40x128xf32> to vector<40x128xf32>
    %2 = vector.extract_strided_slice %1 {offsets = [4, 0], sizes = [32, 128], strides = [1, 1]} : vector<40x128xf32> to vector<32x128xf32>
    %cst = arith.constant 0.000000e+00 : f32
    %3 = vector.broadcast %cst : f32 to vector<32x128xf32>
    %c0_3 = arith.constant 0 : index
    %c0_4 = arith.constant 0 : index
    %4 = vector.load %arg5[%c0_3, %c0_4] : memref<1x128xf32, #tpu.memory_space<vmem>>, vector<1x128xf32>
    %5 = vector.broadcast %4 : vector<1x128xf32> to vector<32x128xf32>
    %6 = arith.addf %3, %5 : vector<32x128xf32>
    %7 = vector.extract_strided_slice %1 {offsets = [1, 0], sizes = [32, 128], strides = [1, 1]} : vector<40x128xf32> to vector<32x128xf32>
    %c0_5 = arith.constant 0 : index
    %c0_6 = arith.constant 0 : index
    %8 = vector.load %arg4[%c0_5, %c0_6] : memref<7x128xf32, #tpu.memory_space<vmem>>, vector<1x128xf32>
    %9 = vector.shape_cast %8 : vector<1x128xf32> to vector<128xf32>
    %10 = vector.shape_cast %9 : vector<128xf32> to vector<1x128xf32>
    %11 = vector.broadcast %10 : vector<1x128xf32> to vector<32x128xf32>
    %12 = arith.mulf %7, %11 : vector<32x128xf32>
    %13 = arith.addf %6, %12 : vector<32x128xf32>
    %14 = vector.extract_strided_slice %1 {offsets = [2, 0], sizes = [32, 128], strides = [1, 1]} : vector<40x128xf32> to vector<32x128xf32>
    %c1 = arith.constant 1 : index
    %c0_7 = arith.constant 0 : index
    %15 = vector.load %arg4[%c1, %c0_7] : memref<7x128xf32, #tpu.memory_space<vmem>>, vector<1x128xf32>
    %16 = vector.shape_cast %15 : vector<1x128xf32> to vector<128xf32>
    %17 = vector.shape_cast %16 : vector<128xf32> to vector<1x128xf32>
    %18 = vector.broadcast %17 : vector<1x128xf32> to vector<32x128xf32>
    %19 = arith.mulf %14, %18 : vector<32x128xf32>
    %20 = arith.addf %13, %19 : vector<32x128xf32>
    %21 = vector.extract_strided_slice %1 {offsets = [3, 0], sizes = [32, 128], strides = [1, 1]} : vector<40x128xf32> to vector<32x128xf32>
    %c2 = arith.constant 2 : index
    %c0_8 = arith.constant 0 : index
    %22 = vector.load %arg4[%c2, %c0_8] : memref<7x128xf32, #tpu.memory_space<vmem>>, vector<1x128xf32>
    %23 = vector.shape_cast %22 : vector<1x128xf32> to vector<128xf32>
    %24 = vector.shape_cast %23 : vector<128xf32> to vector<1x128xf32>
    %25 = vector.broadcast %24 : vector<1x128xf32> to vector<32x128xf32>
    %26 = arith.mulf %21, %25 : vector<32x128xf32>
    %27 = arith.addf %20, %26 : vector<32x128xf32>
    %28 = vector.extract_strided_slice %1 {offsets = [4, 0], sizes = [32, 128], strides = [1, 1]} : vector<40x128xf32> to vector<32x128xf32>
    %c3 = arith.constant 3 : index
    %c0_9 = arith.constant 0 : index
    %29 = vector.load %arg4[%c3, %c0_9] : memref<7x128xf32, #tpu.memory_space<vmem>>, vector<1x128xf32>
    %30 = vector.shape_cast %29 : vector<1x128xf32> to vector<128xf32>
    %31 = vector.shape_cast %30 : vector<128xf32> to vector<1x128xf32>
    %32 = vector.broadcast %31 : vector<1x128xf32> to vector<32x128xf32>
    %33 = arith.mulf %28, %32 : vector<32x128xf32>
    %34 = arith.addf %27, %33 : vector<32x128xf32>
    %35 = vector.extract_strided_slice %1 {offsets = [5, 0], sizes = [32, 128], strides = [1, 1]} : vector<40x128xf32> to vector<32x128xf32>
    %c4 = arith.constant 4 : index
    %c0_10 = arith.constant 0 : index
    %36 = vector.load %arg4[%c4, %c0_10] : memref<7x128xf32, #tpu.memory_space<vmem>>, vector<1x128xf32>
    %37 = vector.shape_cast %36 : vector<1x128xf32> to vector<128xf32>
    %38 = vector.shape_cast %37 : vector<128xf32> to vector<1x128xf32>
    %39 = vector.broadcast %38 : vector<1x128xf32> to vector<32x128xf32>
    %40 = arith.mulf %35, %39 : vector<32x128xf32>
    %41 = arith.addf %34, %40 : vector<32x128xf32>
    %42 = vector.extract_strided_slice %1 {offsets = [6, 0], sizes = [32, 128], strides = [1, 1]} : vector<40x128xf32> to vector<32x128xf32>
    %c5 = arith.constant 5 : index
    %c0_11 = arith.constant 0 : index
    %43 = vector.load %arg4[%c5, %c0_11] : memref<7x128xf32, #tpu.memory_space<vmem>>, vector<1x128xf32>
    %44 = vector.shape_cast %43 : vector<1x128xf32> to vector<128xf32>
    %45 = vector.shape_cast %44 : vector<128xf32> to vector<1x128xf32>
    %46 = vector.broadcast %45 : vector<1x128xf32> to vector<32x128xf32>
    %47 = arith.mulf %42, %46 : vector<32x128xf32>
    %48 = arith.addf %41, %47 : vector<32x128xf32>
    %49 = vector.extract_strided_slice %1 {offsets = [7, 0], sizes = [32, 128], strides = [1, 1]} : vector<40x128xf32> to vector<32x128xf32>
    %c6 = arith.constant 6 : index
    %c0_12 = arith.constant 0 : index
    %50 = vector.load %arg4[%c6, %c0_12] : memref<7x128xf32, #tpu.memory_space<vmem>>, vector<1x128xf32>
    %51 = vector.shape_cast %50 : vector<1x128xf32> to vector<128xf32>
    %52 = vector.shape_cast %51 : vector<128xf32> to vector<1x128xf32>
    %53 = vector.broadcast %52 : vector<1x128xf32> to vector<32x128xf32>
    %54 = arith.mulf %49, %53 : vector<32x128xf32>
    %55 = arith.addf %48, %54 : vector<32x128xf32>
    %c32_i32 = arith.constant 32 : i32
    %56 = arith.muli %arg1, %c32_i32 : i32
    %57 = tpu.iota {dimensions = array<i32: 0>} : vector<32x128xi32>
    %58 = vector.broadcast %56 : i32 to vector<32x128xi32>
    %59 = arith.addi %57, %58 : vector<32x128xi32>
    %60 = arith.index_cast %arg0 : i32 to index
    %61 = memref.load %arg2[%60] : memref<2xi32, #tpu.memory_space<smem>>
    %62 = vector.broadcast %61 : i32 to vector<32x128xi32>
    %63 = arith.cmpi slt, %59, %62 : vector<32x128xi32>
    %cst_13 = arith.constant 0.000000e+00 : f32
    %64 = vector.broadcast %cst_13 : f32 to vector<32x128xf32>
    %65 = arith.select %63, %55, %64 : vector<32x128xi1>, vector<32x128xf32>
    %cst_14 = arith.constant dense<0.000000e+00> : vector<32xf32>
    %66 = vector.multi_reduction <add>, %65, %cst_14 [1] : vector<32x128xf32> to vector<32xf32>
    %67 = vector.shape_cast %66 : vector<32xf32> to vector<32x1xf32>
    %cst_15 = arith.constant 1.280000e+02 : f32
    %68 = vector.broadcast %cst_15 : f32 to vector<32x1xf32>
    %69 = arith.divf %67, %68 : vector<32x1xf32>
    %70 = vector.broadcast %69 : vector<32x1xf32> to vector<32x128xf32>
    %71 = arith.subf %65, %70 : vector<32x128xf32>
    %72 = arith.mulf %71, %71 : vector<32x128xf32>
    %cst_16 = arith.constant dense<0.000000e+00> : vector<32xf32>
    %73 = vector.multi_reduction <add>, %72, %cst_16 [1] : vector<32x128xf32> to vector<32xf32>
    %74 = vector.shape_cast %73 : vector<32xf32> to vector<32x1xf32>
    %cst_17 = arith.constant 1.280000e+02 : f32
    %75 = vector.broadcast %cst_17 : f32 to vector<32x1xf32>
    %76 = arith.divf %74, %75 : vector<32x1xf32>
    %cst_18 = arith.constant 9.99999997E-7 : f32
    %77 = vector.broadcast %cst_18 : f32 to vector<32x1xf32>
    %78 = arith.addf %76, %77 : vector<32x1xf32>
    %79 = math.rsqrt %78 : vector<32x1xf32>
    %80 = vector.broadcast %79 : vector<32x1xf32> to vector<32x128xf32>
    %81 = arith.mulf %71, %80 : vector<32x128xf32>
    %c0_19 = arith.constant 0 : index
    %c0_20 = arith.constant 0 : index
    %82 = vector.load %arg6[%c0_19, %c0_20] : memref<1x128xf32, #tpu.memory_space<vmem>>, vector<1x128xf32>
    %83 = vector.broadcast %82 : vector<1x128xf32> to vector<32x128xf32>
    %84 = arith.mulf %81, %83 : vector<32x128xf32>
    %c0_21 = arith.constant 0 : index
    %c0_22 = arith.constant 0 : index
    %85 = vector.load %arg7[%c0_21, %c0_22] : memref<1x128xf32, #tpu.memory_space<vmem>>, vector<1x128xf32>
    %86 = vector.broadcast %85 : vector<1x128xf32> to vector<32x128xf32>
    %87 = arith.addf %84, %86 : vector<32x128xf32>
    %88 = arith.truncf %87 : vector<32x128xf32> to vector<32x128xbf16>
    %cst_23 = arith.constant 0.000000e+00 : f32
    %89 = vector.broadcast %cst_23 : f32 to vector<32x128xf32>
    %c0_24 = arith.constant 0 : index
    %c0_25 = arith.constant 0 : index
    %90 = vector.load %arg8[%c0_24, %c0_25] : memref<128x512xbf16, #tpu.memory_space<vmem>>, vector<128x256xbf16>
    %cst_26 = arith.constant dense<0.000000e+00> : vector<32x256xf32>
    %91 = tpu.matmul %88, %90, %cst_26 {dimension_numbers = #tpu.dot_dimension_numbers<[1], [0], [0], [1], [0, 0, 1, 1], [], []>} : vector<32x128xbf16>, vector<128x256xbf16>, vector<32x256xf32> -> vector<32x256xf32>
    %c0_27 = arith.constant 0 : index
    %c0_28 = arith.constant 0 : index
    %92 = vector.load %arg9[%c0_27, %c0_28] : memref<1x512xf32, #tpu.memory_space<vmem>>, vector<1x256xf32>
    %93 = vector.broadcast %92 : vector<1x256xf32> to vector<32x256xf32>
    %94 = arith.addf %91, %93 : vector<32x256xf32>
    %cst_29 = arith.constant 5.000000e-01 : f32
    %95 = vector.broadcast %cst_29 : f32 to vector<32x256xf32>
    %96 = arith.mulf %95, %94 : vector<32x256xf32>
    %cst_30 = arith.constant 0.707106769 : f32
    %97 = vector.broadcast %cst_30 : f32 to vector<32x256xf32>
    %98 = arith.mulf %94, %97 : vector<32x256xf32>
    %99 = math.erf %98 : vector<32x256xf32>
    %cst_31 = arith.constant 1.000000e+00 : f32
    %100 = vector.broadcast %cst_31 : f32 to vector<32x256xf32>
    %101 = arith.addf %100, %99 : vector<32x256xf32>
    %102 = arith.mulf %96, %101 : vector<32x256xf32>
    %103 = arith.truncf %102 : vector<32x256xf32> to vector<32x256xbf16>
    %c0_32 = arith.constant 0 : index
    %c0_33 = arith.constant 0 : index
    %104 = vector.load %arg10[%c0_32, %c0_33] : memref<512x128xbf16, #tpu.memory_space<vmem>>, vector<256x128xbf16>
    %cst_34 = arith.constant dense<0.000000e+00> : vector<32x128xf32>
    %105 = tpu.matmul %103, %104, %cst_34 {dimension_numbers = #tpu.dot_dimension_numbers<[1], [0], [0], [1], [0, 0, 1, 1], [], []>} : vector<32x256xbf16>, vector<256x128xbf16>, vector<32x128xf32> -> vector<32x128xf32>
    %106 = arith.addf %89, %105 : vector<32x128xf32>
    %c0_35 = arith.constant 0 : index
    %c256 = arith.constant 256 : index
    %107 = vector.load %arg8[%c0_35, %c256] : memref<128x512xbf16, #tpu.memory_space<vmem>>, vector<128x256xbf16>
    %cst_36 = arith.constant dense<0.000000e+00> : vector<32x256xf32>
    %108 = tpu.matmul %88, %107, %cst_36 {dimension_numbers = #tpu.dot_dimension_numbers<[1], [0], [0], [1], [0, 0, 1, 1], [], []>} : vector<32x128xbf16>, vector<128x256xbf16>, vector<32x256xf32> -> vector<32x256xf32>
    %c0_37 = arith.constant 0 : index
    %c256_38 = arith.constant 256 : index
    %109 = vector.load %arg9[%c0_37, %c256_38] : memref<1x512xf32, #tpu.memory_space<vmem>>, vector<1x256xf32>
    %110 = vector.broadcast %109 : vector<1x256xf32> to vector<32x256xf32>
    %111 = arith.addf %108, %110 : vector<32x256xf32>
    %cst_39 = arith.constant 5.000000e-01 : f32
    %112 = vector.broadcast %cst_39 : f32 to vector<32x256xf32>
    %113 = arith.mulf %112, %111 : vector<32x256xf32>
    %cst_40 = arith.constant 0.707106769 : f32
    %114 = vector.broadcast %cst_40 : f32 to vector<32x256xf32>
    %115 = arith.mulf %111, %114 : vector<32x256xf32>
    %116 = math.erf %115 : vector<32x256xf32>
    %cst_41 = arith.constant 1.000000e+00 : f32
    %117 = vector.broadcast %cst_41 : f32 to vector<32x256xf32>
    %118 = arith.addf %117, %116 : vector<32x256xf32>
    %119 = arith.mulf %113, %118 : vector<32x256xf32>
    %120 = arith.truncf %119 : vector<32x256xf32> to vector<32x256xbf16>
    %c256_42 = arith.constant 256 : index
    %c0_43 = arith.constant 0 : index
    %121 = vector.load %arg10[%c256_42, %c0_43] : memref<512x128xbf16, #tpu.memory_space<vmem>>, vector<256x128xbf16>
    %cst_44 = arith.constant dense<0.000000e+00> : vector<32x128xf32>
    %122 = tpu.matmul %120, %121, %cst_44 {dimension_numbers = #tpu.dot_dimension_numbers<[1], [0], [0], [1], [0, 0, 1, 1], [], []>} : vector<32x256xbf16>, vector<256x128xbf16>, vector<32x128xf32> -> vector<32x128xf32>
    %123 = arith.addf %106, %122 : vector<32x128xf32>
    %c0_45 = arith.constant 0 : index
    %c0_46 = arith.constant 0 : index
    %124 = vector.load %arg11[%c0_45, %c0_46] : memref<1x128xf32, #tpu.memory_space<vmem>>, vector<1x128xf32>
    %125 = vector.broadcast %124 : vector<1x128xf32> to vector<32x128xf32>
    %126 = arith.addf %123, %125 : vector<32x128xf32>
    %c0_47 = arith.constant 0 : index
    %c0_48 = arith.constant 0 : index
    %127 = vector.load %arg12[%c0_47, %c0_48] : memref<1x128xf32, #tpu.memory_space<vmem>>, vector<1x128xf32>
    %128 = vector.broadcast %127 : vector<1x128xf32> to vector<32x128xf32>
    %129 = arith.mulf %128, %126 : vector<32x128xf32>
    %130 = arith.addf %2, %129 : vector<32x128xf32>
    %c0_49 = arith.constant 0 : index
    %c0_50 = arith.constant 0 : index
    %c0_51 = arith.constant 0 : index
    %131 = vector.load %arg13[%c0_49, %c0_50, %c0_51] : memref<1x32x128xf32, #tpu.memory_space<vmem>>, vector<1x32x128xf32>
    %132 = vector.shape_cast %131 : vector<1x32x128xf32> to vector<32x128xf32>
    %133 = vector.shape_cast %130 : vector<32x128xf32> to vector<1x32x128xf32>
    tpu.vector_store %arg13[%c0_49, %c0_50, %c0_51], %133 {strides = array<i32>} : memref<1x32x128xf32, #tpu.memory_space<vmem>>, vector<1x32x128xf32>,
    return
  }
  func.func @transform_0(%arg0: i32, %arg1: i32, %arg2: memref<2xi32, #tpu.memory_space<smem>>) -> (i32, i32, i32, i32) {
    %c0_i32 = arith.constant 0 : i32
    %c0_i32_0 = arith.constant 0 : i32
    %c0_i32_1 = arith.constant 0 : i32
    return %arg0, %arg1, %c0_i32, %c0_i32_0 : i32, i32, i32, i32
  }
  func.func @transform_1(%arg0: i32, %arg1: i32, %arg2: memref<2xi32, #tpu.memory_space<smem>>) -> (i32, i32) {
    %c0_i32 = arith.constant 0 : i32
    %c0_i32_0 = arith.constant 0 : i32
    %c0_i32_1 = arith.constant 0 : i32
    return %c0_i32, %c0_i32_0 : i32, i32
  }
  func.func @transform_2(%arg0: i32, %arg1: i32, %arg2: memref<2xi32, #tpu.memory_space<smem>>) -> (i32, i32) {
    %c0_i32 = arith.constant 0 : i32
    %c0_i32_0 = arith.constant 0 : i32
    %c0_i32_1 = arith.constant 0 : i32
    return %c0_i32, %c0_i32_0 : i32, i32
  }
  func.func @transform_3(%arg0: i32, %arg1: i32, %arg2: memref<2xi32, #tpu.memory_space<smem>>) -> (i32, i32) {
    %c0_i32 = arith.constant 0 : i32
    %c0_i32_0 = arith.constant 0 : i32
    %c0_i32_1 = arith.constant 0 : i32
    return %c0_i32, %c0_i32_0 : i32, i32
  }
  func.func @transform_4(%arg0: i32, %arg1: i32, %arg2: memref<2xi32, #tpu.memory_space<smem>>) -> (i32, i32) {
    %c0_i32 = arith.constant 0 : i32
    %c0_i32_0 = arith.constant 0 : i32
    %c0_i32_1 = arith.constant 0 : i32
    return %c0_i32, %c0_i32_0 : i32, i32
  }
  func.func @transform_5(%arg0: i32, %arg1: i32, %arg2: memref<2xi32, #tpu.memory_space<smem>>) -> (i32, i32) {
    %c0_i32 = arith.constant 0 : i32
    %c0_i32_0 = arith.constant 0 : i32
    %c0_i32_1 = arith.constant 0 : i32
    return %c0_i32, %c0_i32_0 : i32, i32
  }
  func.func @transform_6(%arg0: i32, %arg1: i32, %arg2: memref<2xi32, #tpu.memory_space<smem>>) -> (i32, i32) {
    %c0_i32 = arith.constant 0 : i32
    %c0_i32_0 = arith.constant 0 : i32
    %c0_i32_1 = arith.constant 0 : i32
    return %c0_i32, %c0_i32_0 : i32, i32
  }
  func.func @transform_7(%arg0: i32, %arg1: i32, %arg2: memref<2xi32, #tpu.memory_space<smem>>) -> (i32, i32) {
    %c0_i32 = arith.constant 0 : i32
    %c0_i32_0 = arith.constant 0 : i32
    %c0_i32_1 = arith.constant 0 : i32
    return %c0_i32, %c0_i32_0 : i32, i32
  }
  func.func @transform_8(%arg0: i32, %arg1: i32, %arg2: memref<2xi32, #tpu.memory_space<smem>>) -> (i32, i32) {
    %c0_i32 = arith.constant 0 : i32
    %c0_i32_0 = arith.constant 0 : i32
    %c0_i32_1 = arith.constant 0 : i32
    return %c0_i32, %c0_i32_0 : i32, i32
  }
  func.func @transform_9(%arg0: i32, %arg1: i32, %arg2: memref<2xi32, #tpu.memory_space<smem>>) -> (i32, i32) {
    %c0_i32 = arith.constant 0 : i32
    %c0_i32_0 = arith.constant 0 : i32
    %c0_i32_1 = arith.constant 0 : i32
    return %c0_i32, %c0_i32_0 : i32, i32
  }
  func.func @transform_10(%arg0: i32, %arg1: i32, %arg2: memref<2xi32, #tpu.memory_space<smem>>) -> (i32, i32, i32) {
    %c0_i32 = arith.constant 0 : i32
    %c0_i32_0 = arith.constant 0 : i32
    return %arg0, %arg1, %c0_i32 : i32, i32, i32
  }
}

module attributes {stable_mosaic.version = 11 : i64} {
  func.func @downsample_kernel(%arg0: i32, %arg1: i32, %arg2: memref<2xi32, #tpu.memory_space<smem>>, %arg3: memref<1x32x128xf32, #tpu.memory_space<vmem>>, %arg4: memref<1x32x128xf32, #tpu.memory_space<vmem>>, %arg5: memref<1x128xf32, #tpu.memory_space<vmem>>, %arg6: memref<1x128xf32, #tpu.memory_space<vmem>>, %arg7: memref<128x128xbf16, #tpu.memory_space<vmem>>, %arg8: memref<1x128xf32, #tpu.memory_space<vmem>>, %arg9: memref<1x32x128xf32, #tpu.memory_space<vmem>>) attributes {dimension_semantics = [#tpu.dimension_semantics<parallel>, #tpu.dimension_semantics<parallel>], iteration_bounds = array<i64: 2, 2>, scalar_prefetch = 1 : i64, scratch_operands = 0 : i64, tpu.core_type = #tpu.core_type<tc>, window_params = [{transform_indices = @transform_0, window_bounds = array<i64: 1, 32, 128>}, {transform_indices = @transform_1, window_bounds = array<i64: 1, 32, 128>}, {pipeline_mode = #tpu.pipeline_mode<synchronous>, transform_indices = @transform_2, window_bounds = array<i64: 1, 128>}, {pipeline_mode = #tpu.pipeline_mode<synchronous>, transform_indices = @transform_3, window_bounds = array<i64: 1, 128>}, {pipeline_mode = #tpu.pipeline_mode<synchronous>, transform_indices = @transform_4, window_bounds = array<i64: 128, 128>}, {pipeline_mode = #tpu.pipeline_mode<synchronous>, transform_indices = @transform_5, window_bounds = array<i64: 1, 128>}, {transform_indices = @transform_6, window_bounds = array<i64: 1, 32, 128>}]} {
    %c0 = arith.constant 0 : index
    %c0_0 = arith.constant 0 : index
    %c0_1 = arith.constant 0 : index
    %0 = vector.load %arg3[%c0, %c0_0, %c0_1] : memref<1x32x128xf32, #tpu.memory_space<vmem>>, vector<1x32x128xf32>
    %1 = vector.shape_cast %0 : vector<1x32x128xf32> to vector<32x128xf32>
    %c0_2 = arith.constant 0 : index
    %c0_3 = arith.constant 0 : index
    %c0_4 = arith.constant 0 : index
    %2 = vector.load %arg4[%c0_2, %c0_3, %c0_4] : memref<1x32x128xf32, #tpu.memory_space<vmem>>, vector<1x32x128xf32>
    %3 = vector.shape_cast %2 : vector<1x32x128xf32> to vector<32x128xf32>
    %4 = arith.addf %1, %3 : vector<32x128xf32>
    %cst = arith.constant dense<0.000000e+00> : vector<32xf32>
    %5 = vector.multi_reduction <add>, %4, %cst [1] : vector<32x128xf32> to vector<32xf32>
    %6 = vector.shape_cast %5 : vector<32xf32> to vector<32x1xf32>
    %cst_5 = arith.constant 1.280000e+02 : f32
    %7 = vector.broadcast %cst_5 : f32 to vector<32x1xf32>
    %8 = arith.divf %6, %7 : vector<32x1xf32>
    %9 = vector.broadcast %8 : vector<32x1xf32> to vector<32x128xf32>
    %10 = arith.subf %4, %9 : vector<32x128xf32>
    %11 = arith.mulf %10, %10 : vector<32x128xf32>
    %cst_6 = arith.constant dense<0.000000e+00> : vector<32xf32>
    %12 = vector.multi_reduction <add>, %11, %cst_6 [1] : vector<32x128xf32> to vector<32xf32>
    %13 = vector.shape_cast %12 : vector<32xf32> to vector<32x1xf32>
    %cst_7 = arith.constant 1.280000e+02 : f32
    %14 = vector.broadcast %cst_7 : f32 to vector<32x1xf32>
    %15 = arith.divf %13, %14 : vector<32x1xf32>
    %cst_8 = arith.constant 9.99999997E-7 : f32
    %16 = vector.broadcast %cst_8 : f32 to vector<32x1xf32>
    %17 = arith.addf %15, %16 : vector<32x1xf32>
    %18 = math.rsqrt %17 : vector<32x1xf32>
    %19 = vector.broadcast %18 : vector<32x1xf32> to vector<32x128xf32>
    %20 = arith.mulf %10, %19 : vector<32x128xf32>
    %c0_9 = arith.constant 0 : index
    %c0_10 = arith.constant 0 : index
    %21 = vector.load %arg5[%c0_9, %c0_10] : memref<1x128xf32, #tpu.memory_space<vmem>>, vector<1x128xf32>
    %22 = vector.broadcast %21 : vector<1x128xf32> to vector<32x128xf32>
    %23 = arith.mulf %20, %22 : vector<32x128xf32>
    %c0_11 = arith.constant 0 : index
    %c0_12 = arith.constant 0 : index
    %24 = vector.load %arg6[%c0_11, %c0_12] : memref<1x128xf32, #tpu.memory_space<vmem>>, vector<1x128xf32>
    %25 = vector.broadcast %24 : vector<1x128xf32> to vector<32x128xf32>
    %26 = arith.addf %23, %25 : vector<32x128xf32>
    %27 = arith.truncf %26 : vector<32x128xf32> to vector<32x128xbf16>
    %c0_13 = arith.constant 0 : index
    %c0_14 = arith.constant 0 : index
    %28 = vector.load %arg7[%c0_13, %c0_14] : memref<128x128xbf16, #tpu.memory_space<vmem>>, vector<128x128xbf16>
    %cst_15 = arith.constant dense<0.000000e+00> : vector<32x128xf32>
    %29 = tpu.matmul %27, %28, %cst_15 {dimension_numbers = #tpu.dot_dimension_numbers<[1], [0], [0], [1], [0, 0, 1, 1], [], []>} : vector<32x128xbf16>, vector<128x128xbf16>, vector<32x128xf32> -> vector<32x128xf32>
    %c0_16 = arith.constant 0 : index
    %c0_17 = arith.constant 0 : index
    %30 = vector.load %arg8[%c0_16, %c0_17] : memref<1x128xf32, #tpu.memory_space<vmem>>, vector<1x128xf32>
    %31 = vector.broadcast %30 : vector<1x128xf32> to vector<32x128xf32>
    %32 = arith.addf %29, %31 : vector<32x128xf32>
    %c32_i32 = arith.constant 32 : i32
    %33 = arith.muli %arg1, %c32_i32 : i32
    %34 = tpu.iota {dimensions = array<i32: 0>} : vector<32x128xi32>
    %35 = vector.broadcast %33 : i32 to vector<32x128xi32>
    %36 = arith.addi %34, %35 : vector<32x128xi32>
    %37 = arith.index_cast %arg0 : i32 to index
    %38 = memref.load %arg2[%37] : memref<2xi32, #tpu.memory_space<smem>>
    %39 = vector.broadcast %38 : i32 to vector<32x128xi32>
    %40 = arith.cmpi slt, %36, %39 : vector<32x128xi32>
    %cst_18 = arith.constant 0.000000e+00 : f32
    %41 = vector.broadcast %cst_18 : f32 to vector<32x128xf32>
    %42 = arith.select %40, %32, %41 : vector<32x128xi1>, vector<32x128xf32>
    %c0_19 = arith.constant 0 : index
    %c0_20 = arith.constant 0 : index
    %c0_21 = arith.constant 0 : index
    %43 = vector.load %arg9[%c0_19, %c0_20, %c0_21] : memref<1x32x128xf32, #tpu.memory_space<vmem>>, vector<1x32x128xf32>
    %44 = vector.shape_cast %43 : vector<1x32x128xf32> to vector<32x128xf32>
    %45 = vector.shape_cast %42 : vector<32x128xf32> to vector<1x32x128xf32>
    tpu.vector_store %arg9[%c0_19, %c0_20, %c0_21], %45 {strides = array<i32>} : memref<1x32x128xf32, #tpu.memory_space<vmem>>, vector<1x32x128xf32>,
    return
  }
  func.func @transform_0(%arg0: i32, %arg1: i32, %arg2: memref<2xi32, #tpu.memory_space<smem>>) -> (i32, i32, i32) {
    %c0_i32 = arith.constant 0 : i32
    %c0_i32_0 = arith.constant 0 : i32
    return %arg0, %arg1, %c0_i32 : i32, i32, i32
  }
  func.func @transform_1(%arg0: i32, %arg1: i32, %arg2: memref<2xi32, #tpu.memory_space<smem>>) -> (i32, i32, i32) {
    %c0_i32 = arith.constant 0 : i32
    %c0_i32_0 = arith.constant 0 : i32
    return %arg0, %arg1, %c0_i32 : i32, i32, i32
  }
  func.func @transform_2(%arg0: i32, %arg1: i32, %arg2: memref<2xi32, #tpu.memory_space<smem>>) -> (i32, i32) {
    %c0_i32 = arith.constant 0 : i32
    %c0_i32_0 = arith.constant 0 : i32
    %c0_i32_1 = arith.constant 0 : i32
    return %c0_i32, %c0_i32_0 : i32, i32
  }
  func.func @transform_3(%arg0: i32, %arg1: i32, %arg2: memref<2xi32, #tpu.memory_space<smem>>) -> (i32, i32) {
    %c0_i32 = arith.constant 0 : i32
    %c0_i32_0 = arith.constant 0 : i32
    %c0_i32_1 = arith.constant 0 : i32
    return %c0_i32, %c0_i32_0 : i32, i32
  }
  func.func @transform_4(%arg0: i32, %arg1: i32, %arg2: memref<2xi32, #tpu.memory_space<smem>>) -> (i32, i32) {
    %c0_i32 = arith.constant 0 : i32
    %c0_i32_0 = arith.constant 0 : i32
    %c0_i32_1 = arith.constant 0 : i32
    return %c0_i32, %c0_i32_0 : i32, i32
  }
  func.func @transform_5(%arg0: i32, %arg1: i32, %arg2: memref<2xi32, #tpu.memory_space<smem>>) -> (i32, i32) {
    %c0_i32 = arith.constant 0 : i32
    %c0_i32_0 = arith.constant 0 : i32
    %c0_i32_1 = arith.constant 0 : i32
    return %c0_i32, %c0_i32_0 : i32, i32
  }
  func.func @transform_6(%arg0: i32, %arg1: i32, %arg2: memref<2xi32, #tpu.memory_space<smem>>) -> (i32, i32, i32) {
    %c0_i32 = arith.constant 0 : i32
    %c0_i32_0 = arith.constant 0 : i32
    return %arg0, %arg1, %c0_i32 : i32, i32, i32
  }
}

</mosaic_0001>

<bundles_post_ra>
// kernel: convnext_forward.6
= control target key start
LH: loop header
LB: loop body
LE: loop exit
PB: predicated region body
PF: predicated region fallthrough
CT: control target
= control target key end

     0   :  { %s988_s0 = inlined_call_operand.vmem [shape: s32[2], index: 0, kind: input, shape index: {}]   ;;  %s989_s1 = inlined_call_operand.vmem [shape: f32[2,64,128], index: 1, kind: input, shape index: {}]   ;;  %s990_s2 = inlined_call_operand.vmem [shape: f32[2,64,128], index: 2, kind: input, shape index: {}]   ;;  %s991_s3 = inlined_call_operand.vmem [shape: f32[1,128], index: 3, kind: input, shape index: {}]   ;;  %s992_s4 = inlined_call_operand.vmem [shape: f32[1,128], index: 4, kind: input, shape index: {}]   ;;  %s993_s5 = inlined_call_operand.vmem [shape: bf16[128,128], index: 5, kind: input, shape index: {}]   ;;  %s994_s6 = inlined_call_operand.vmem [shape: f32[1,128], index: 6, kind: input, shape index: {}]   ;;  %s995_s7 = inlined_call_operand.vmem [shape: f32[2,64,128], index: 7, kind: output, shape index: {}]  }
   0x1   :  { %s12_s26 = sshll.u32 %s988_s0, 4  ;;  %s13_s26 = int_to_ptr.vmem [resolvable:$true] %s12_s26 }
   0x2   :  { %s784_s27 = scalar_lea.vmem %s13_s26, 16  ;;  %p789_p1 = scmp.lt.s32.totalorder %s13_s26, %s13_s26 }
   0x3   :  { %p785_p0 = scmp.ne.s32.totalorder %s13_s26, %s784_s27  ;;  %p790_p2 = scmp.lt.s32.totalorder %s784_s27, %s784_s27 }
   0x5   :  { %p791_p3 = por %p790_p2, %p789_p1 }
   0x7   :  { %p792_p4 = pnand %p791_p3, %p785_p0 }
   0x9   :  { %795 = shalt.err (!%p792_p4)  }
   0xa   :  { %s838_s28 = smov [#allocation3]  }
   0xb   :  { %15 = dma.vmem_to_smem %s13_s26, 16, %s838_s28, [#allocation2] }
   0xc   :  { %816 = dma.done.wait [#allocation2], 16 }
   0xd   :  { %817 = vsyncadd [#allocation2], 4294967280 }
   0xe   :  { %17 = sfence }
   0xf   :  { %s882_s29 = smov 0   ;;  %s884_s30 = smov 0  }
  0x10   :  { %s886_s8 = smov 0   ;;  %s888_s0 = smov 0  }
  0x11   :  { %s890_s9 = smov 0  }
  0x12 LB: > { %s32_s10 = sadd.s32 1, %s828_s8  ;;  %s35_s11 = sadd.s32 1, %s832_s0  ;;  %s836_s9 = sphi %s890_s9, %s23_s9   ;;  %s832_s0 = sphi %s888_s0, %s999_s0   ;;  %s828_s8 = sphi %s886_s8, %s998_s8   ;;  %s824_s30 = sphi %s884_s30, %s997_s30   ;;  %s820_s29 = sphi %s882_s29, %s996_s29  }
  0x13   : > { %p33_p5 = scmp.ge.s32.totalorder %s32_s10, 2  ;;  %p673_p6 = scmp.ge.s32.totalorder %s836_s9, 1 }
  0x14   : > { %p257_p7 = scmp.lt.s32.totalorder %s836_s9, 5 }
  0x15   : > { %s1001_s10 = smov (%p33_p5, %s32_s10), 0  ;;  %s1003_s11 = smov (!%p33_p5, %s35_s11), %s832_s0 }
  0x16   : > { %p258_p8 = pnand %p673_p6, %p257_p7  ;;  %p37_p9 = scmp.ge.s32.totalorder %s1003_s11, 2 }
  0x17   : > { %s674_s12 = sshll.u32 (!%p258_p8), %s820_s29, 2  ;;  %p305_p10 = scmp.lt.s32.totalorder (!%p258_p8), %s824_s30, 1 }
  0x18   : > { %s1005_s11 = smov (%p37_p9, %s1003_s11), 0  ;;  %261 = sbr.rel (%p258_p8) target bundleno = 558 (0x22e), region = 44 }
  0x19   : > { %p307_p11 = scmp.lt.s32.totalorder (!%p258_p8), %s674_s12, 7  ;;  %s547_s27 = sld [smem:[#allocation3 + %s824_s30]] (!%p258_p8) }
  0x1a   : > { %s694_s28 = sshll.u32 (!%p258_p8), %s820_s29, 5 }
  0x1d   : > { %s306_s13 = scalar_select %p305_p10, %s824_s30, 1  ;;  %v768_v28 = vld [vmem:[%s993_s5 + $0x38] sm:$0xff]   ;;  %v769_v29 = vld [vmem:[%s993_s5 + $0x30] sm:$0xff]   ;;  %v770_v30 = vld [vmem:[%s993_s5 + $0x28] sm:$0xff]  }
  0x1e   : > { %s1007_s12 = smov (!%p307_p11, %s674_s12), 7  ;;  %707 = vmatprep.subr.bf16.mxu0 %v768_v28  ;;  %v771_v31 = vld [vmem:[%s993_s5 + $0x20] sm:$0xff]   ;;  %v772_v32 = vld [vmem:[%s993_s5 + $0x18] sm:$0xff]   ;;  %v773_v33 = vld [vmem:[%s993_s5 + $0x10] sm:$0xff]  }
  0x1f   : > { %s675_s14 = sshll.u32 %s306_s13, 3  ;;  %708 = vmatpush3.bf16.msra.mxu0 %v768_v28  ;;  %v774_v34 = vld [vmem:[%s993_s5 + $0x8] sm:$0xff]   ;;  %v775_v35 = vld [vmem:[%s993_s5] sm:$0xff]  }
  0x20   : > { %s310_s15 = sadd.s32 %s675_s14, %s1007_s12  ;;  %709 = vmatprep.subr.bf16.mxu0 %v769_v29  ;;  %v683_v50 = vld [vmem:[%s991_s3] ss:$0 sm:$0xff] }
  0x21   : > { %s919_s16 = sshll.u32 %s310_s15, 3  ;;  %v684_v55 = vld [vmem:[%s992_s4] ss:$0 sm:$0xff] }
  0x22   : > { %s312_s19 = scalar_lea.vmem %s989_s1, %s919_s16  ;;  %s322_s22 = scalar_lea.vmem %s990_s2, %s919_s16 }
  0x23   : > { %v335_v0 = vld [vmem:[%s312_s19] sm:$0xff]  ;;  %v337_v2 = vld [vmem:[%s312_s19 + $0x10] sm:$0xff]  ;;  %v336_v5 = vld [vmem:[%s312_s19 + $0x8] sm:$0xff]  ;;  %710 = vmatpush3.bf16.msra.mxu0 %v769_v29  ;;  %s332_s17 = scalar_lea.vmem %s995_s7, %s919_s16 }
  0x24   : > { %v339_v1 = vld [vmem:[%s322_s22] sm:$0xff]  ;;  %v341_v4 = vld [vmem:[%s322_s22 + $0x10] sm:$0xff]  ;;  %v340_v6 = vld [vmem:[%s322_s22 + $0x8] sm:$0xff]  ;;  %711 = vmatprep.subr.bf16.mxu0 %v770_v30 }
  0x25   : > { %v343_v3 = vadd.f32 %v339_v1, %v335_v0  ;;  %v345_v7 = vadd.f32 %v341_v4, %v337_v2  ;;  %v338_v8 = vld [vmem:[%s312_s19 + $0x18] sm:$0xff]  ;;  %v344_v10 = vadd.f32 %v340_v6, %v336_v5  ;;  %v537_v4 = vlaneseq }
  0x26   : > { %v342_v9 = vld [vmem:[%s322_s22 + $0x18] sm:$0xff] }
  0x27   : > { %347 = vadd.xlane.f32.xlu0 %v343_v3  ;;  %351 = vadd.xlane.f32.xlu1 %v345_v7  ;;  %v346_v11 = vadd.f32 %v342_v9, %v338_v8  ;;  %v538_v5 = vshrl.u32 %v537_v4, 7 }
  0x28   : > { %712 = vmatpush3.bf16.msra.mxu0 %v770_v30 }
  0x29   : > { %713 = vmatprep.subr.bf16.mxu0 %v771_v31  ;;  %v540_v6 = vadd.s32 16, %v538_v5  ;;  %v541_v9 = vadd.s32 24, %v538_v5 }
  0x2b   : > { %349 = vadd.xlane.f32.xlu0 %v344_v10  ;;  %353 = vadd.xlane.f32.xlu1 %v346_v11 }
  0x2c   : > { %714 = vmatpush3.bf16.msra.mxu0 %v771_v31 }
  0x2d   : > { %715 = vmatprep.subr.bf16.mxu0 %v772_v32 }
  0x30   : > { %716 = vmatpush3.bf16.msra.mxu0 %v772_v32 }
  0x31   : > { %717 = vmatprep.subr.bf16.mxu0 %v773_v33 }
  0x34   : > { %718 = vmatpush3.bf16.msra.mxu0 %v773_v33 }
  0x35   : > { %719 = vmatprep.subr.bf16.mxu0 %v774_v34 }
  0x38   : > { %720 = vmatpush3.bf16.msra.mxu0 %v774_v34 }
  0x39   : > { %721 = vmatprep.subr.bf16.mxu0 %v775_v35 }
  0x3c   : > { %722 = vmatpush3.bf16.msra.mxu0 %v775_v35 }
  0xb0   : > { %v348_v12 = vpop.xlane.xlu0 %347  ;;  %v352_v14 = vpop.xlane.xlu1 %351 }
  0xb1   : > { %v356_v13 = vmul.f32 0.0078125, %v348_v12  ;;  %v358_v15 = vmul.f32 0.0078125, %v352_v14 }
  0xb3   : > { %v360_v16 = vsub.f32 %v343_v3, %v356_v13  ;;  %v929_v17 = vsub.f32 %v345_v7, %v358_v15  ;;  %v542_v7 = vstv %s694_s28  ;;  %v539_v13 = vadd.s32 8, %v538_v5 }
  0xb4   : > { %v350_v18 = vpop.xlane.xlu0 %349  ;;  %v354_v21 = vpop.xlane.xlu1 %353  ;;  %v545_v8 = vadd.s32 %v542_v7, %v540_v6  ;;  %v543_v12 = vadd.s32 %v542_v7, %v538_v5  ;;  %v546_v15 = vadd.s32 %v542_v7, %v541_v9 }
  0xb5   : > { %v357_v19 = vmul.f32 0.0078125, %v350_v18  ;;  %v364_v20 = vmul.f32 %v360_v16, %v360_v16  ;;  %v359_v22 = vmul.f32 0.0078125, %v354_v21  ;;  %v366_v24 = vmul.f32 %v929_v17, %v929_v17 }
  0xb6   : > { %v544_v18 = vadd.s32 %v542_v7, %v539_v13 }
  0xb7   : > { %v361_v23 = vsub.f32 %v344_v10, %v357_v19  ;;  %368 = vadd.xlane.f32.xlu0 %v364_v20  ;;  %v363_v25 = vsub.f32 %v346_v11, %v359_v22  ;;  %v548_v10 = vstv %s547_s27  ;;  %v685_v11 = vld [vmem:[%s994_s6] ss:$0 sm:$0xff] }
  0xb8   : > { %vm551_vm0 = vcmp.lt.s32.totalorder %v545_v8, %v548_v10  ;;  %vm549_vm1 = vcmp.lt.s32.totalorder %v543_v12, %v548_v10  ;;  %vm552_vm2 = vcmp.lt.s32.totalorder %v546_v15, %v548_v10  ;;  %vm550_vm3 = vcmp.lt.s32.totalorder %v544_v18, %v548_v10 }
  0xb9   : > { %v365_v26 = vmul.f32 %v361_v23, %v361_v23  ;;  %v367_v27 = vmul.f32 %v363_v25, %v363_v25 }
  0xbb   : > { %372 = vadd.xlane.f32.xlu0 %v366_v24  ;;  %370 = vadd.xlane.f32.xlu1 %v365_v26 }
  0xbf   : > { %374 = vadd.xlane.f32.xlu1 %v367_v27 }
 0x140   : > { %v369_v36 = vpop.xlane.xlu0 %368 }
 0x141   : > { %v376_v37 = vmul.f32 0.0078125, %v369_v36 }
 0x143   : > { %v380_v38 = vadd.f32 1e-06, %v376_v37 }
 0x144   : > { %v371_v39 = vpop.xlane.xlu1 %370  ;;  %v373_v40 = vpop.xlane.xlu0 %372 }
 0x145   : > { %776 = vrsqrt.f32 %v380_v38  ;;  %v377_v41 = vmul.f32 0.0078125, %v371_v39  ;;  %v378_v42 = vmul.f32 0.0078125, %v373_v40 }
 0x147   : > { %v381_v43 = vadd.f32 1e-06, %v377_v41  ;;  %v382_v44 = vadd.f32 1e-06, %v378_v42 }
 0x148   : > { %v375_v45 = vpop.xlane.xlu1 %374 }
 0x149   : > { %778 = vrsqrt.f32 %v381_v43  ;;  %v379_v46 = vmul.f32 0.0078125, %v375_v45 }
 0x14a   : > { %780 = vrsqrt.f32 %v382_v44 }
 0x14b   : > { %v383_v47 = vadd.f32 1e-06, %v379_v46 }
 0x14d   : > { %782 = vrsqrt.f32 %v383_v47 }
 0x152   : > { %v777_v48 = vpop.eup %776 }
 0x153   : > { %v388_v49 = vmul.f32 %v777_v48, %v360_v16 }
 0x155   : > { %v399_v54 = vmul.f32 %v683_v50, %v388_v49 }
 0x156   : > { %v779_v51 = vpop.eup %778 }
 0x157   : > { %v781_v52 = vpop.eup %780  ;;  %v389_v53 = vmul.f32 %v779_v51, %v361_v23  ;;  %v410_v59 = vadd.f32 %v684_v55, %v399_v54 }
 0x158   : > { %v390_v56 = vmul.f32 %v781_v52, %v929_v17 }
 0x159   : > { %v400_v57 = vmul.f32 %v683_v50, %v389_v53 }
 0x15a   : > { %v783_v58 = vpop.eup %782  ;;  %v401_v62 = vmul.f32 %v683_v50, %v390_v56 }
 0x15b   : > { %v411_v60 = vadd.f32 %v684_v55, %v400_v57  ;;  %v391_v61 = vmul.f32 %v783_v58, %v363_v25 }
 0x15c   : > { %v412_v1 = vadd.f32 %v684_v55, %v401_v62 }
 0x15d   : > { %v414_v63 = vpack.c.bf16 %v411_v60, %v410_v59  ;;  %v402_v0 = vmul.f32 %v683_v50, %v391_v61 }
 0x15f   : > { %723 = vmatprep.mubr.bf16.mxu0 %v414_v63  ;;  %v413_v2 = vadd.f32 %v684_v55, %v402_v0 }
 0x161   : > { %v415_v3 = vpack.c.bf16 %v413_v2, %v412_v1 }
 0x163   : > { %724 = vmatmul.mubr.bf16.vlgmr.msra.gmra.mxu0 %v415_v3 }
 0x223   : > { %v725_v14 = vpop.f32.mrf.mxu0 }
 0x224   : > { %v530_v16 = vadd.f32 %v725_v14, %v685_v11 }
 0x225   : > { %v521_v17 = vpop.f32.mrf.mxu0 }
 0x226   : > { %v555_v19 = vsel %vm551_vm0, %v530_v16, 0.0  ;;  %v522_v20 = vadd.f32 %v685_v11, %v521_v17 }
 0x227   : > { %559 = vst [vmem:[%s332_s17 + $0x10] sm:$0xff] %v555_v19  ;;  %v726_v21 = vpop.f32.mrf.mxu0 }
 0x228   : > { %v553_v22 = vsel %vm549_vm1, %v522_v20, 0.0  ;;  %v533_v23 = vadd.f32 %v726_v21, %v685_v11 }
 0x229   : > { %557 = vst [vmem:[%s332_s17] sm:$0xff] %v553_v22  ;;  %v524_v24 = vpop.f32.mrf.mxu0 }
 0x22a   : > { %v556_v25 = vsel %vm552_vm2, %v533_v23, 0.0  ;;  %v525_v26 = vadd.f32 %v685_v11, %v524_v24 }
 0x22b   : > { %560 = vst [vmem:[%s332_s17 + $0x18] sm:$0xff] %v556_v25 }
 0x22c   : > { %v554_v27 = vsel %vm550_vm3, %v525_v26, 0.0 }
 0x22d   : > { %558 = vst [vmem:[%s332_s17 + $0x8] sm:$0xff] %v554_v27 }
 0x22e PF: > { %s23_s9 = sadd.s32 1, %s836_s9   ;;  %s996_s29 = smov %s828_s8 }
 0x22f   : > { %p20_p12 = scmp.ge.s32.totalorder %s23_s9, 6   ;;  %s997_s30 = smov %s832_s0 }
 0x230   : > { %s998_s8 = smov %s1001_s10  ;;  %s999_s0 = smov %s1005_s11 }
 0x231   :  { %22 = sbr.rel (!%p20_p12) target bundleno = 18 (0x12), region = 77 }

// kernel: convnext_forward.5
= control target key start
LH: loop header
LB: loop body
LE: loop exit
PB: predicated region body
PF: predicated region fallthrough
CT: control target
= control target key end

     0   :  { %s2651_s0 = inlined_call_operand.vmem [shape: s32[2], index: 0, kind: input, shape index: {}]   ;;  %s2652_s1 = inlined_call_operand.vmem [shape: f32[2,2,40,128], index: 1, kind: input, shape index: {}]   ;;  %s2653_s2 = inlined_call_operand.vmem [shape: f32[7,128], index: 2, kind: input, shape index: {}]   ;;  %s2654_s3 = inlined_call_operand.vmem [shape: f32[1,128], index: 3, kind: input, shape index: {}]   ;;  %s2655_s4 = inlined_call_operand.vmem [shape: f32[1,128], index: 4, kind: input, shape index: {}]   ;;  %s2656_s5 = inlined_call_operand.vmem [shape: f32[1,128], index: 5, kind: input, shape index: {}]   ;;  %s2657_s6 = inlined_call_operand.vmem [shape: bf16[128,512], index: 6, kind: input, shape index: {}]   ;;  %s2658_s7 = inlined_call_operand.vmem [shape: f32[1,512], index: 7, kind: input, shape index: {}]   ;;  %s2659_s8 = inlined_call_operand.vmem [shape: bf16[512,128], index: 8, kind: input, shape index: {}]   ;;  %s2660_s9 = inlined_call_operand.vmem [shape: f32[1,128], index: 9, kind: input, shape index: {}]   ;;  %s2661_s10 = inlined_call_operand.vmem [shape: f32[1,128], index: 10, kind: input, shape index: {}]   ;;  %s2662_s11 = inlined_call_operand.vmem [shape: f32[2,64,128], index: 11, kind: output, shape index: {}]  }
   0x1   :  { %s16_s19 = sshll.u32 %s2651_s0, 4  ;;  %s17_s19 = int_to_ptr.vmem [resolvable:$true] %s16_s19 }
   0x2   :  { %s1969_s20 = scalar_lea.vmem %s17_s19, 16  ;;  %p1974_p1 = scmp.lt.s32.totalorder %s17_s19, %s17_s19 }
   0x3   :  { %p1970_p0 = scmp.ne.s32.totalorder %s17_s19, %s1969_s20  ;;  %p1975_p2 = scmp.lt.s32.totalorder %s1969_s20, %s1969_s20 }
   0x5   :  { %p1976_p3 = por %p1975_p2, %p1974_p1 }
   0x7   :  { %p1977_p4 = pnand %p1976_p3, %p1970_p0 }
   0x9   :  { %1980 = shalt.err (!%p1977_p4)  }
   0xa   :  { %s2023_s21 = smov [#allocation3]  }
   0xb   :  { %19 = dma.vmem_to_smem %s17_s19, 16, %s2023_s21, [#allocation2] }
   0xc   :  { %2001 = dma.done.wait [#allocation2], 16 }
   0xd   :  { %2002 = vsyncadd [#allocation2], 4294967280 }
   0xe   :  { %21 = sfence }
   0xf   :  { %s2088_s22 = smov 0   ;;  %s2090_s23 = smov 0  }
  0x10   :  { %s2092_s24 = smov 0   ;;  %s2094_s0 = smov 0  }
  0x11   :  { %s2096_s25 = smov 0  }
  0x12 LB: > { %s36_s26 = sadd.s32 1, %s2013_s24  ;;  %s39_s27 = sadd.s32 1, %s2017_s0  ;;  %s2021_s25 = sphi %s2096_s25, %s27_s25   ;;  %s2017_s0 = sphi %s2094_s0, %s2666_s0   ;;  %s2013_s24 = sphi %s2092_s24, %s2665_s24   ;;  %s2009_s23 = sphi %s2090_s23, %s2664_s23   ;;  %s2005_s22 = sphi %s2088_s22, %s2663_s22  }
  0x13   : > { %p37_p5 = scmp.ge.s32.totalorder %s36_s26, 2  ;;  %p1660_p6 = scmp.ge.s32.totalorder %s2021_s25, 1 }
  0x14   : > { %p339_p7 = scmp.lt.s32.totalorder %s2021_s25, 5 }
  0x15   : > { %s2668_s26 = smov (%p37_p5, %s36_s26), 0  ;;  %s2670_s27 = smov (!%p37_p5, %s39_s27), %s2017_s0 }
  0x16   : > { %p340_p8 = pnand %p1660_p6, %p339_p7  ;;  %p41_p9 = scmp.ge.s32.totalorder %s2670_s27, 2 }
  0x17   : > { %p385_p10 = scmp.lt.s32.totalorder (!%p340_p8), %s2009_s23, 1  ;;  %p387_p11 = scmp.lt.s32.totalorder (!%p340_p8), %s2005_s22, 1 }
  0x18   : > { %s2672_s27 = smov (%p41_p9, %s2670_s27), 0  ;;  %343 = sbr.rel (%p340_p8) target bundleno = 833 (0x341), region = 60 }
  0x19   : > { %s1673_s12 = sshll.u32 (!%p340_p8), %s2005_s22, 5 }
  0x1d   : > { %s2125_s28 = scalar_select %p385_p10, %s2009_s23, 1  ;;  %v644_v0 = vlaneseq  ;;  %v2133_v1 = vld [vmem:[%s2653_s2] ss:$0 sm:$0xff]  ;;  %v2138_v2 = vld [vmem:[%s2653_s2 + $0x1] ss:$0 sm:$0xff]  ;;  %v2147_v5 = vstv %s1673_s12  ;;  %vm448_vm0 = vcmask 1046528  }
  0x1e   : > { %s388_s29 = scalar_select %p387_p11, %s2005_s22, 1  ;;  %v2145_v4 = vld [vmem:[%s2653_s2 + $0x2] ss:$0 sm:$0xff]  ;;  %v2152_v6 = vld [vmem:[%s2654_s3] ss:$0 sm:$0xff]  ;;  %vm483_vm1 = vcmask 1045504  }
  0x1f   : > { %s1801_s30 = smul.u32 10, %s2125_s28  ;;  %v2140_v3 = vshrl.u32 %v644_v0, 7  ;;  %vm518_vm2 = vcmask 1044480   ;;  %v2181_v17 = vld [vmem:[%s2653_s2 + $0x3] ss:$0 sm:$0xff]  ;;  %vm553_vm3 = vcmask 1043456  }
  0x20   : > { %s1800_s13 = smul.u32 5, %s388_s29  ;;  %v2198_v26 = vld [vmem:[%s2653_s2 + $0x4] ss:$0 sm:$0xff]  ;;  %v2205_v31 = vld [vmem:[%s2653_s2 + $0x5] ss:$0 sm:$0xff]  ;;  %vm588_vm4 = vcmask 1042432  }
  0x21   : > { %v2166_v10 = vadd.s32 %v2147_v5, %v2140_v3  ;;  %v2169_v11 = vadd.s32 16, %v2140_v3  ;;  %v2172_v12 = vadd.s32 8, %v2140_v3  ;;  %vm623_vm5 = vcmask 1041408   ;;  %v2228_v44 = vld [vmem:[%s2653_s2 + $0x6] ss:$0 sm:$0xff]  ;;  %s1662_s12 = sshll.u32 %s2005_s22, 2 }
  0x22   : > { %s391_s18 = sadd.s32 %s1801_s30, %s1800_s13  ;;  %p397_p12 = scmp.lt.s32.totalorder %s1662_s12, 7 }
  0x23   : > { %s1661_s21 = sshll.u32 %s391_s18, 3  ;;  %s1663_s13 = sshll.u32 %s2125_s28, 3 }
  0x24   : > { %s2157_s17 = scalar_lea.vmem %s2652_s1, %s1661_s21  ;;  %s2222_s21 = sld [smem:[#allocation3 + %s2009_s23]] }
  0x25   : > { %v405_v7 = vld [vmem:[%s2157_s17] sm:$0xff]  ;;  %v406_v8 = vld [vmem:[%s2157_s17 + $0x8] sm:$0xff]  ;;  %v2162_v9 = vld [vmem:[%s2157_s17 + $0x10] sm:$0xff]  ;;  %s2674_s12 = smov (!%p397_p12, %s1662_s12), 7 }
  0x26   : > { %v423_v13 = vmul.f32 %v2133_v1, %v405_v7  ;;  %v424_v14 = vmul.f32 %v2133_v1, %v406_v8  ;;  %v438_v15 = vmul.f32 %v2138_v2, %v405_v7  ;;  %v439_v16 = vmul.f32 %v2138_v2, %v406_v8  ;;  %s400_s20 = sadd.s32 %s1663_s13, %s2674_s12 }
  0x27   : > { %v2185_v18 = vmul.f32 %v2138_v2, %v2162_v9  ;;  %v473_v19 = vmul.f32 %v2145_v4, %v405_v7  ;;  %v474_v20 = vmul.f32 %v2145_v4, %v406_v8  ;;  %v2191_v21 = vmul.f32 %v2145_v4, %v2162_v9  ;;  %s1664_s29 = sshll.u32 %s400_s20, 3 }
  0x28   : > { %v428_v22 = vadd.f32 %v2152_v6, %v423_v13  ;;  %v429_v23 = vadd.f32 %v2152_v6, %v424_v14  ;;  %v449_v24 = vrot.slane %v438_v15, 1  ;;  %v450_v25 = vrot.slane %v439_v16, 1  ;;  %v408_v13 = vld [vmem:[%s2157_s17 + $0x18] sm:$0xff]  ;;  %v2255_v14 = vld [vmem:[%s2157_s17 + $0x20] sm:$0xff]  ;;  %s2621_s23 = scalar_lea.vmem %s2662_s11, %s1664_s29 }
  0x29   : > { %v452_v27 = vrot.slane %v2185_v18, 1  ;;  %v484_v28 = vrot.slane %v473_v19, 2  ;;  %v485_v29 = vrot.slane %v474_v20, 2  ;;  %v487_v30 = vrot.slane %v2191_v21, 2 }
  0x2a   : > { %v451_v32 = vsel %vm448_vm0, %v449_v24, %v450_v25  ;;  %v508_v33 = vmul.f32 %v2181_v17, %v405_v7  ;;  %v509_v34 = vmul.f32 %v2181_v17, %v406_v8  ;;  %v2212_v35 = vmul.f32 %v2181_v17, %v2162_v9 }
  0x2b   : > { %v453_v36 = vsel %vm448_vm0, %v450_v25, %v452_v27  ;;  %v463_v37 = vadd.f32 %v451_v32, %v428_v22  ;;  %v486_v38 = vsel %vm483_vm1, %v484_v28, %v485_v29  ;;  %v488_v39 = vsel %vm483_vm1, %v485_v29, %v487_v30 }
  0x2c   : > { %v464_v40 = vadd.f32 %v453_v36, %v429_v23  ;;  %v519_v41 = vrot.slane %v508_v33, 3  ;;  %v520_v42 = vrot.slane %v509_v34, 3  ;;  %v522_v43 = vrot.slane %v2212_v35, 3 }
  0x2d   : > { %v498_v45 = vadd.f32 %v486_v38, %v463_v37  ;;  %v543_v46 = vmul.f32 %v2198_v26, %v405_v7  ;;  %v544_v47 = vmul.f32 %v2198_v26, %v406_v8  ;;  %v2234_v48 = vmul.f32 %v2198_v26, %v2162_v9 }
  0x2e   : > { %v499_v49 = vadd.f32 %v488_v39, %v464_v40  ;;  %v521_v50 = vsel %vm518_vm2, %v519_v41, %v520_v42  ;;  %v523_v51 = vsel %vm518_vm2, %v520_v42, %v522_v43  ;;  %v578_v52 = vmul.f32 %v2205_v31, %v405_v7 }
  0x2f   : > { %v533_v53 = vadd.f32 %v521_v50, %v498_v45  ;;  %v554_v54 = vrot.slane %v543_v46, 4  ;;  %v555_v55 = vrot.slane %v544_v47, 4  ;;  %v557_v56 = vrot.slane %v2234_v48, 4 }
  0x30   : > { %v534_v57 = vadd.f32 %v523_v51, %v499_v49  ;;  %v579_v58 = vmul.f32 %v2205_v31, %v406_v8  ;;  %v2245_v59 = vmul.f32 %v2205_v31, %v2162_v9  ;;  %v589_v60 = vrot.slane %v578_v52, 5 }
  0x31   : > { %v556_v61 = vsel %vm553_vm3, %v554_v54, %v555_v55  ;;  %v558_v62 = vsel %vm553_vm3, %v555_v55, %v557_v56  ;;  %v613_v63 = vmul.f32 %v2228_v44, %v405_v7  ;;  %v614_v0 = vmul.f32 %v2228_v44, %v406_v8 }
  0x32   : > { %v568_v15 = vadd.f32 %v556_v61, %v533_v53  ;;  %v569_v16 = vadd.f32 %v558_v62, %v534_v57  ;;  %v590_v19 = vrot.slane %v579_v58, 5  ;;  %v592_v20 = vrot.slane %v2245_v59, 5 }
  0x33   : > { %v2260_v22 = vmul.f32 %v2228_v44, %v2162_v9  ;;  %v624_v23 = vrot.slane %v613_v63, 6  ;;  %v625_v24 = vrot.slane %v614_v0, 6  ;;  %v2263_v25 = vstv %s2222_s21 }
  0x34   : > { %v591_v7 = vsel %vm588_vm4, %v589_v60, %v590_v19  ;;  %v593_v8 = vsel %vm588_vm4, %v590_v19, %v592_v20  ;;  %vm656_vm6 = vcmp.lt.s32.totalorder %v2166_v10, %v2263_v25  ;;  %v425_v28 = vmul.f32 %v2133_v1, %v2162_v9 }
  0x35   : > { %v603_v29 = vadd.f32 %v591_v7, %v568_v15  ;;  %v604_v32 = vadd.f32 %v593_v8, %v569_v16  ;;  %v626_v33 = vsel %vm623_vm5, %v624_v23, %v625_v24  ;;  %v627_v34 = vrot.slane %v2260_v22, 6 }
  0x36   : > { %v426_v36 = vmul.f32 %v2133_v1, %v408_v13  ;;  %v430_v37 = vadd.f32 %v2152_v6, %v425_v28  ;;  %v441_v38 = vmul.f32 %v2138_v2, %v408_v13  ;;  %v2280_v39 = vmul.f32 %v2138_v2, %v2255_v14 }
  0x37   : > { %v628_v40 = vsel %vm623_vm5, %v625_v24, %v627_v34  ;;  %v638_v41 = vadd.f32 %v626_v33, %v603_v29  ;;  %v476_v9 = vmul.f32 %v2145_v4, %v408_v13  ;;  %v2286_v42 = vmul.f32 %v2145_v4, %v2255_v14 }
  0x38   : > { %v639_v45 = vadd.f32 %v628_v40, %v604_v32  ;;  %v431_v46 = vadd.f32 %v2152_v6, %v426_v36  ;;  %v454_v47 = vrot.slane %v441_v38, 1  ;;  %v456_v49 = vrot.slane %v2280_v39, 1 }
  0x39   : > { %v665_v50 = vrot.slane %v638_v41, 1  ;;  %v489_v51 = vrot.slane %v476_v9, 2  ;;  %v491_v2 = vrot.slane %v2286_v42, 2  ;;  %v511_v52 = vmul.f32 %v2181_v17, %v408_v13 }
  0x3a   : > { %v666_v53 = vrot.slane %v639_v45, 1  ;;  %v455_v54 = vsel %vm448_vm0, %v452_v27, %v454_v47  ;;  %v457_v4 = vsel %vm448_vm0, %v454_v47, %v456_v49  ;;  %v512_v55 = vmul.f32 %v2181_v17, %v2255_v14 }
  0x3b   : > { %v465_v57 = vadd.f32 %v455_v54, %v430_v37  ;;  %v466_v58 = vadd.f32 %v457_v4, %v431_v46  ;;  %v490_v60 = vsel %vm483_vm1, %v487_v30, %v489_v51  ;;  %v492_v61 = vsel %vm483_vm1, %v489_v51, %v491_v2  ;;  %v1844_v4 = vld [vmem:[%s2657_s6 + $0xe4] ss:$16 sps:$4 sm:$0xff]  }
  0x3c   : > { %v667_v62 = vsel %vm448_vm0, %v665_v50, %v666_v53  ;;  %v524_v63 = vrot.slane %v511_v52, 3  ;;  %v526_v0 = vrot.slane %v512_v55, 3  ;;  %v546_v18 = vmul.f32 %v2198_v26, %v408_v13  ;;  %v1846_v55 = vld [vmem:[%s2657_s6 + $0xec] ss:$16 sps:$4 sm:$0xff]   ;;  %859 = vmatprep.subr.bf16.mxu0 %v1844_v4  ;;  %v1674_v4 = vld [vmem:[%s2655_s4] ss:$0 sm:$0xff] }
  0x3d   : > { %v2307_v27 = vsel %vm656_vm6, %v667_v62, 0.0  ;;  %v500_v17 = vadd.f32 %v490_v60, %v465_v57  ;;  %v501_v15 = vadd.f32 %v492_v61, %v466_v58  ;;  %v547_v21 = vmul.f32 %v2198_v26, %v2255_v14  ;;  %1096 = vmatprep.subr.bf16.mxu1 %v1846_v55 }
  0x3e   : > { %682 = vadd.xlane.f32.xlu0 %v2307_v27  ;;  %v525_v30 = vsel %vm518_vm2, %v522_v43, %v524_v63  ;;  %v527_v16 = vsel %vm518_vm2, %v524_v63, %v526_v0  ;;  %v559_v19 = vrot.slane %v546_v18, 4  ;;  %v581_v22 = vmul.f32 %v2205_v31, %v408_v13 }
  0x3f   : > { %v535_v23 = vadd.f32 %v525_v30, %v500_v17  ;;  %v536_v10 = vadd.f32 %v527_v16, %v501_v15  ;;  %v561_v24 = vrot.slane %v547_v21, 4  ;;  %v582_v7 = vmul.f32 %v2205_v31, %v2255_v14  ;;  %v1852_v16 = vld [vmem:[%s2657_s6 + $0xcc] ss:$16 sps:$4 sm:$0xff]  }
  0x40   : > { %v560_v26 = vsel %vm553_vm3, %v557_v56, %v559_v19  ;;  %v594_v8 = vrot.slane %v581_v22, 5  ;;  %v616_v35 = vmul.f32 %v2228_v44, %v408_v13  ;;  %v617_v43 = vmul.f32 %v2228_v44, %v2255_v14  ;;  %v1855_v22 = vld [vmem:[%s2657_s6 + $0xc8] ss:$16 sps:$4 sm:$0xff]  }
  0x41   : > { %v562_v28 = vsel %vm553_vm3, %v559_v19, %v561_v24  ;;  %v570_v29 = vadd.f32 %v560_v26, %v535_v23  ;;  %v596_v32 = vrot.slane %v582_v7, 5  ;;  %v651_v13 = vadd.s32 %v2147_v5, %v2172_v12  ;;  %v1854_v19 = vld [vmem:[%s2657_s6 + $0xc0] ss:$16 sps:$4 sm:$0xff]   ;;  %v1856_v26 = vld [vmem:[%s2657_s6 + $0xa4] ss:$16 sps:$4 sm:$0xff]  }
  0x42   : > { %v571_v33 = vadd.f32 %v562_v28, %v536_v10  ;;  %v595_v36 = vsel %vm588_vm4, %v592_v20, %v594_v8  ;;  %v629_v31 = vrot.slane %v616_v35, 6  ;;  %v631_v37 = vrot.slane %v617_v43, 6  ;;  %v1860_v35 = vld [vmem:[%s2657_s6 + $0xa0] ss:$16 sps:$4 sm:$0xff]   ;;  %v1861_v43 = vld [vmem:[%s2657_s6 + $0xa8] ss:$16 sps:$4 sm:$0xff]  }
  0x43   : > { %v597_v48 = vsel %vm588_vm4, %v594_v8, %v596_v32  ;;  %v605_v56 = vadd.f32 %v595_v36, %v570_v29  ;;  %v427_v44 = vmul.f32 %v2133_v1, %v2255_v14  ;;  %v652_v59 = vadd.s32 %v2147_v5, %v2169_v11  ;;  %v1858_v8 = vld [vmem:[%s2657_s6 + $0xac] ss:$16 sps:$4 sm:$0xff]   ;;  %v1862_v28 = vld [vmem:[%s2657_s6 + $0x84] ss:$16 sps:$4 sm:$0xff]  }
  0x44   : > { %v606_v38 = vadd.f32 %v597_v48, %v571_v33  ;;  %v630_v39 = vsel %vm623_vm5, %v627_v34, %v629_v31  ;;  %v632_v40 = vsel %vm623_vm5, %v629_v31, %v631_v37  ;;  %vm657_vm7 = vcmp.lt.s32.totalorder %v651_v13, %v2263_v25  ;;  %v1864_v29 = vld [vmem:[%s2657_s6 + $0x8c] ss:$16 sps:$4 sm:$0xff]   ;;  %v1867_v33 = vld [vmem:[%s2657_s6 + $0x88] ss:$16 sps:$4 sm:$0xff]   ;;  %v1868_v36 = vld [vmem:[%s2657_s6 + $0x64] ss:$16 sps:$4 sm:$0xff]  }
  0x45   : > { %v640_v20 = vadd.f32 %v630_v39, %v605_v56  ;;  %v432_v41 = vadd.f32 %v2152_v6, %v427_v44  ;;  %vm658_vm8 = vcmp.lt.s32.totalorder %v652_v59, %v2263_v25  ;;  %v648_v50 = vadd.s32 24, %v2140_v3  ;;  %v1870_v31 = vld [vmem:[%s2657_s6 + $0x6c] ss:$16 sps:$4 sm:$0xff]   ;;  %v1873_v48 = vld [vmem:[%s2657_s6 + $0x68] ss:$16 sps:$4 sm:$0xff]  }
  0x46   : > { %v641_v9 = vadd.f32 %v632_v40, %v606_v38  ;;  %v1874_v56 = vld [vmem:[%s2657_s6 + $0x44] ss:$16 sps:$4 sm:$0xff]   ;;  %v1876_v13 = vld [vmem:[%s2657_s6 + $0x4c] ss:$16 sps:$4 sm:$0xff]   ;;  %v1878_v44 = vld [vmem:[%s2657_s6 + $0x40] ss:$16 sps:$4 sm:$0xff]  }
  0x47   : > { %v668_v42 = vrot.slane %v640_v20, 1  ;;  %v467_v45 = vadd.f32 %v456_v49, %v432_v41  ;;  %v653_v52 = vadd.s32 %v2147_v5, %v648_v50  ;;  %v1848_v5 = vld [vmem:[%s2657_s6 + $0xe0] ss:$16 sps:$4 sm:$0xff]   ;;  %v1879_v38 = vld [vmem:[%s2657_s6 + $0x48] ss:$16 sps:$4 sm:$0xff]   ;;  %v2024_v59 = vmov 0  }
  0x48   : > { %v670_v12 = vrot.slane %v641_v9, 1  ;;  %860 = vmatpush1.bf16.msra.mxu0 %v1848_v5  ;;  %v1880_v39 = vld [vmem:[%s2657_s6 + $0x24] ss:$16 sps:$4 sm:$0xff]   ;;  %v1882_v40 = vld [vmem:[%s2657_s6 + $0x2c] ss:$16 sps:$4 sm:$0xff]   ;;  %891 = vmatprep.mubr.bf16.mxu0 %v2024_v59 }
  0x49   : > { %v669_v1 = vsel %vm448_vm0, %v666_v53, %v668_v42  ;;  %v502_v14 = vadd.f32 %v491_v2, %v467_v45  ;;  %vm659_vm9 = vcmp.lt.s32.totalorder %v653_v52, %v2263_v25  ;;  %v1849_v25 = vld [vmem:[%s2657_s6 + $0xe8] ss:$16 sps:$4 sm:$0xff]   ;;  %1128 = vmatprep.mubr.bf16.mxu1 %v2024_v59  ;;  %v1884_v20 = vld [vmem:[%s2657_s6 + $0x20] ss:$16 sps:$4 sm:$0xff]   ;;  %v1886_v9 = vld [vmem:[%s2657_s6 + $0x4] ss:$16 sps:$4 sm:$0xff]  }
  0x4a   : > { %v671_v34 = vsel %vm448_vm0, %v668_v42, %v670_v12  ;;  %v679_v46 = vsel %vm657_vm7, %v669_v1, 0.0  ;;  %1097 = vmatpush1.bf16.msra.mxu1 %v1849_v25  ;;  %v1885_v41 = vld [vmem:[%s2657_s6 + $0x28] ss:$16 sps:$4 sm:$0xff]   ;;  %v1888_v42 = vld [vmem:[%s2657_s6 + $0xc] ss:$16 sps:$4 sm:$0xff]  }
  0x4b   : > { %v680_v47 = vsel %vm658_vm8, %v671_v34, 0.0  ;;  %684 = vadd.xlane.f32.xlu0 %v679_v46  ;;  %v537_v11 = vadd.f32 %v526_v0, %v502_v14  ;;  %1098 = vmatprep.subr.bf16.mxu1 %v1852_v16  ;;  %v1890_v45 = vld [vmem:[%s2657_s6] ss:$16 sps:$4 sm:$0xff]  }
  0x4c   : > { %686 = vadd.xlane.f32.xlu1 %v680_v47 }
  0x4d   : > { %v572_v6 = vadd.f32 %v561_v24, %v537_v11 }
  0x4e   : > { %1099 = vmatpush1.bf16.msra.mxu1 %v1855_v22  ;;  %v1892_v22 = vld [vmem:[%s2659_s8 + $0xf8] sm:$0xff]  }
  0x4f   : > { %v607_v51 = vadd.f32 %v596_v32, %v572_v6  ;;  %1100 = vmatprep.subr.bf16.mxu1 %v1858_v8  ;;  %v1866_v32 = vld [vmem:[%s2657_s6 + $0x80] ss:$16 sps:$4 sm:$0xff]  }
  0x50   : > { %v1899_v8 = vld [vmem:[%s2659_s8 + $0x30] sm:$0xff]  }
  0x51   : > { %v642_v49 = vadd.f32 %v631_v37, %v607_v51  ;;  %v1872_v37 = vld [vmem:[%s2657_s6 + $0x60] ss:$16 sps:$4 sm:$0xff]  }
  0x52   : > { %1101 = vmatpush1.bf16.msra.mxu1 %v1861_v43  ;;  %v1901_v43 = vld [vmem:[%s2659_s8 + $0x68] sm:$0xff]  }
  0x53   : > { %v672_v54 = vrot.slane %v642_v49, 1  ;;  %1102 = vmatprep.subr.bf16.mxu1 %v1864_v29  ;;  %v1903_v29 = vld [vmem:[%s2659_s8 + $0x28] sm:$0xff]  }
  0x55   : > { %v673_v53 = vsel %vm448_vm0, %v670_v12, %v672_v54  ;;  %v1891_v12 = vld [vmem:[%s2657_s6 + $0x8] ss:$16 sps:$4 sm:$0xff]  }
  0x56   : > { %v681_v2 = vsel %vm659_vm9, %v673_v53, 0.0  ;;  %1103 = vmatpush1.bf16.msra.mxu1 %v1867_v33  ;;  %v1905_v33 = vld [vmem:[%s2659_s8 + $0x60] sm:$0xff]  }
  0x57   : > { %688 = vadd.xlane.f32.xlu1 %v681_v2  ;;  %1104 = vmatprep.subr.bf16.mxu1 %v1870_v31  ;;  %v1907_v31 = vld [vmem:[%s2659_s8 + $0x20] sm:$0xff]  }
  0x5a   : > { %1105 = vmatpush1.bf16.msra.mxu1 %v1873_v48  ;;  %v1909_v48 = vld [vmem:[%s2659_s8 + $0x58] sm:$0xff]  }
  0x5b   : > { %1106 = vmatprep.subr.bf16.mxu1 %v1876_v13  ;;  %v1911_v13 = vld [vmem:[%s2659_s8 + $0x18] sm:$0xff]  }
  0x5e   : > { %1107 = vmatpush1.bf16.msra.mxu1 %v1879_v38  ;;  %v1913_v38 = vld [vmem:[%s2659_s8 + $0x50] sm:$0xff]  }
  0x5f   : > { %1108 = vmatprep.subr.bf16.mxu1 %v1882_v40  ;;  %v1915_v40 = vld [vmem:[%s2659_s8 + $0x10] sm:$0xff]  }
  0x62   : > { %1109 = vmatpush1.bf16.msra.mxu1 %v1885_v41  ;;  %v1918_v41 = vld [vmem:[%s2659_s8 + $0x88] sm:$0xff]  }
  0x63   : > { %1110 = vmatprep.subr.bf16.mxu1 %v1888_v42  ;;  %v1920_v42 = vld [vmem:[%s2659_s8 + $0xc0] sm:$0xff]  }
  0x66   : > { %1111 = vmatpush1.bf16.msra.mxu1 %v1891_v12  ;;  %v1922_v12 = vld [vmem:[%s2659_s8 + $0x80] sm:$0xff]  }
  0xc7   : > { %v683_v57 = vpop.xlane.xlu0 %682 }
  0xc8   : > { %v691_v58 = vmul.f32 0.0078125, %v683_v57  ;;  %v1675_v57 = vld [vmem:[%s2656_s5] ss:$0 sm:$0xff] }
  0xca   : > { %v2360_v60 = vsub.f32 %v2307_v27, %v691_v58  ;;  %v1850_v27 = vld [vmem:[%s2657_s6 + $0xc4] ss:$16 sps:$4 sm:$0xff]  }
  0xcb   : > { %861 = vmatprep.subr.bf16.mxu0 %v1850_v27 }
  0xcc   : > { %v699_v61 = vmul.f32 %v2360_v60, %v2360_v60  ;;  %862 = vmatpush1.bf16.msra.mxu0 %v1854_v19 }
  0xcd   : > { %863 = vmatprep.subr.bf16.mxu0 %v1856_v26  ;;  %v1898_v26 = vld [vmem:[%s2659_s8 + $0xb0] sm:$0xff]  }
  0xce   : > { %703 = vadd.xlane.f32.xlu0 %v699_v61 }
  0xd0   : > { %864 = vmatpush1.bf16.msra.mxu0 %v1860_v35  ;;  %v1900_v35 = vld [vmem:[%s2659_s8 + $0xe8] sm:$0xff]  }
  0xd1   : > { %865 = vmatprep.subr.bf16.mxu0 %v1862_v28  ;;  %v1902_v28 = vld [vmem:[%s2659_s8 + $0xa8] sm:$0xff]  }
  0xd4   : > { %v685_v62 = vpop.xlane.xlu0 %684  ;;  %866 = vmatpush1.bf16.msra.mxu0 %v1866_v32  ;;  %v1904_v32 = vld [vmem:[%s2659_s8 + $0xe0] sm:$0xff]  }
  0xd5   : > { %v687_v63 = vpop.xlane.xlu1 %686  ;;  %v692_v0 = vmul.f32 0.0078125, %v685_v62  ;;  %867 = vmatprep.subr.bf16.mxu0 %v1868_v36  ;;  %v1906_v36 = vld [vmem:[%s2659_s8 + $0xa0] sm:$0xff]  }
  0xd6   : > { %v693_v18 = vmul.f32 0.0078125, %v687_v63 }
  0xd7   : > { %v2364_v17 = vsub.f32 %v679_v46, %v692_v0 }
  0xd8   : > { %v2366_v15 = vsub.f32 %v680_v47, %v693_v18  ;;  %868 = vmatpush1.bf16.msra.mxu0 %v1872_v37  ;;  %v1908_v37 = vld [vmem:[%s2659_s8 + $0xd8] sm:$0xff]  }
  0xd9   : > { %v700_v21 = vmul.f32 %v2364_v17, %v2364_v17  ;;  %869 = vmatprep.subr.bf16.mxu0 %v1874_v56  ;;  %v1910_v56 = vld [vmem:[%s2659_s8 + $0x98] sm:$0xff]  }
  0xda   : > { %v701_v30 = vmul.f32 %v2366_v15, %v2366_v15 }
  0xdb   : > { %705 = vadd.xlane.f32.xlu1 %v700_v21 }
  0xdc   : > { %707 = vadd.xlane.f32.xlu0 %v701_v30  ;;  %870 = vmatpush1.bf16.msra.mxu0 %v1878_v44  ;;  %v1912_v44 = vld [vmem:[%s2659_s8 + $0xd0] sm:$0xff]  }
  0xdd   : > { %871 = vmatprep.subr.bf16.mxu0 %v1880_v39  ;;  %v1914_v39 = vld [vmem:[%s2659_s8 + $0x90] sm:$0xff]  }
  0xe0   : > { %v689_v23 = vpop.xlane.xlu1 %688  ;;  %872 = vmatpush1.bf16.msra.mxu0 %v1884_v20  ;;  %v1917_v20 = vld [vmem:[%s2659_s8 + $0x48] sm:$0xff]  }
  0xe1   : > { %v694_v10 = vmul.f32 0.0078125, %v689_v23  ;;  %873 = vmatprep.subr.bf16.mxu0 %v1886_v9  ;;  %v1894_v23 = vld [vmem:[%s2659_s8 + $0xb8] sm:$0xff]   ;;  %v1919_v9 = vld [vmem:[%s2659_s8 + $0x8] sm:$0xff]  }
  0xe3   : > { %v2384_v24 = vsub.f32 %v681_v2, %v694_v10  ;;  %v1895_v10 = vld [vmem:[%s2659_s8 + $0x38] sm:$0xff]  }
  0xe4   : > { %874 = vmatpush1.bf16.msra.mxu0 %v1890_v45  ;;  %v1921_v45 = vld [vmem:[%s2659_s8 + $0x40] sm:$0xff]  }
  0xe5   : > { %v702_v7 = vmul.f32 %v2384_v24, %v2384_v24  ;;  %1744 = vmatprep.subr.bf16.mxu0 %v1892_v22 }
  0xe7   : > { %709 = vadd.xlane.f32.xlu1 %v702_v7  ;;  %v1897_v7 = vld [vmem:[%s2659_s8 + $0x70] sm:$0xff]  }
 0x157   : > { %v704_v1 = vpop.xlane.xlu0 %703 }
 0x158   : > { %v711_v14 = vmul.f32 0.0078125, %v704_v1  ;;  %v1923_v1 = vld [vmem:[%s2659_s8] sm:$0xff]  }
 0x15a   : > { %v715_v34 = vadd.f32 1e-06, %v711_v14  ;;  %v771_v14 = vsub.s32 0, %v2140_v3 }
 0x15c   : > { %1924 = vrsqrt.f32 %v715_v34  ;;  %v767_v34 = vld [vmem:[%s2658_s7] sm:$0x3] }
 0x164   : > { %v706_v46 = vpop.xlane.xlu1 %705 }
 0x165   : > { %v712_v47 = vmul.f32 0.0078125, %v706_v46  ;;  %v708_v11 = vpop.xlane.xlu0 %707  ;;  %v1004_v46 = vld [vmem:[%s2658_s7 + $0x2] sm:$0x3] }
 0x166   : > { %v713_v6 = vmul.f32 0.0078125, %v708_v11  ;;  %v772_v11 = vrot.slane %v767_v34, %v771_v14 }
 0x167   : > { %v716_v50 = vadd.f32 1e-06, %v712_v47  ;;  %v775_v47 = vsub.s32 1, %v2140_v3 }
 0x168   : > { %v717_v51 = vadd.f32 1e-06, %v713_v6 }
 0x169   : > { %1926 = vrsqrt.f32 %v716_v50  ;;  %v1925_v52 = vpop.eup %1924  ;;  %v1009_v50 = vrot.slane %v1004_v46, %v771_v14 }
 0x16a   : > { %1928 = vrsqrt.f32 %v717_v51  ;;  %v723_v2 = vmul.f32 %v1925_v52, %v2360_v60  ;;  %v776_v52 = vrot.slane %v767_v34, %v775_v47 }
 0x16c   : > { %v734_v25 = vmul.f32 %v1674_v4, %v723_v2 }
 0x16e   : > { %v745_v61 = vadd.f32 %v1675_v57, %v734_v25 }
 0x170   : > { %v710_v49 = vpop.xlane.xlu1 %709 }
 0x171   : > { %v714_v54 = vmul.f32 0.0078125, %v710_v49  ;;  %v1013_v49 = vrot.slane %v1004_v46, %v775_v47 }
 0x173   : > { %v718_v53 = vadd.f32 1e-06, %v714_v54 }
 0x175   : > { %1930 = vrsqrt.f32 %v718_v53 }
 0x176   : > { %v1927_v55 = vpop.eup %1926 }
 0x177   : > { %v724_v5 = vmul.f32 %v1927_v55, %v2364_v17  ;;  %v1929_v63 = vpop.eup %1928 }
 0x178   : > { %v725_v60 = vmul.f32 %v1929_v63, %v2366_v15  ;;  %v1893_v15 = vld [vmem:[%s2659_s8 + $0x78] sm:$0xff]  }
 0x179   : > { %v735_v58 = vmul.f32 %v1674_v4, %v724_v5  ;;  %1772 = vmatprep.subr.bf16.mxu1 %v1893_v15 }
 0x17a   : > { %v736_v17 = vmul.f32 %v1674_v4, %v725_v60 }
 0x17b   : > { %v746_v62 = vadd.f32 %v1675_v57, %v735_v58 }
 0x17c   : > { %v747_v27 = vadd.f32 %v1675_v57, %v736_v17 }
 0x17d   : > { %v749_v0 = vpack.c.bf16 %v746_v62, %v745_v61 }
 0x17f   : > { %892 = vmatmul.mubr.bf16.vlgmr.msra.gmra.mxu0 %v749_v0  ;;  %1129 = vmatmul.mubr.bf16.vlgmr.msra.gmra.mxu1 %v749_v0 }
 0x180   : > { %901 = vmatprep.mubr.bf16.mxu0 %v2024_v59  ;;  %1138 = vmatprep.mubr.bf16.mxu1 %v2024_v59  ;;  %v1916_v59 = vld [vmem:[%s2659_s8 + $0xc8] sm:$0xff]  }
 0x181   : > { %1745 = vmatpush3.bf16.msra.mxu0 %v1894_v23  ;;  %1773 = vmatpush3.bf16.msra.mxu1 %v1895_v10 }
 0x182   : > { %v1931_v18 = vpop.eup %1930  ;;  %1774 = vmatprep.subr.bf16.mxu1 %v1897_v7 }
 0x183   : > { %v726_v21 = vmul.f32 %v1931_v18, %v2384_v24  ;;  %v1896_v24 = vld [vmem:[%s2659_s8 + $0xf0] sm:$0xff]  }
 0x184   : > { %1746 = vmatprep.subr.bf16.mxu0 %v1896_v24 }
 0x185   : > { %v737_v30 = vmul.f32 %v1674_v4, %v726_v21  ;;  %1747 = vmatpush3.bf16.msra.mxu0 %v1898_v26  ;;  %1775 = vmatpush3.bf16.msra.mxu1 %v1899_v8 }
 0x186   : > { %1748 = vmatprep.subr.bf16.mxu0 %v1900_v35  ;;  %1776 = vmatprep.subr.bf16.mxu1 %v1901_v43 }
 0x187   : > { %v748_v16 = vadd.f32 %v1675_v57, %v737_v30 }
 0x189   : > { %v750_v19 = vpack.c.bf16 %v748_v16, %v747_v27  ;;  %1749 = vmatpush3.bf16.msra.mxu0 %v1902_v28  ;;  %1777 = vmatpush3.bf16.msra.mxu1 %v1903_v29 }
 0x18a   : > { %1750 = vmatprep.subr.bf16.mxu0 %v1904_v32  ;;  %1778 = vmatprep.subr.bf16.mxu1 %v1905_v33 }
 0x18b   : > { %902 = vmatmul.mubr.bf16.gmra.mxu0 %v750_v19  ;;  %1139 = vmatmul.mubr.bf16.gmra.mxu1 %v750_v19 }
 0x18d   : > { %1751 = vmatpush3.bf16.msra.mxu0 %v1906_v36  ;;  %1779 = vmatpush3.bf16.msra.mxu1 %v1907_v31 }
 0x18e   : > { %1752 = vmatprep.subr.bf16.mxu0 %v1908_v37  ;;  %1780 = vmatprep.subr.bf16.mxu1 %v1909_v48 }
 0x191   : > { %1753 = vmatpush3.bf16.msra.mxu0 %v1910_v56  ;;  %1781 = vmatpush3.bf16.msra.mxu1 %v1911_v13 }
 0x192   : > { %1754 = vmatprep.subr.bf16.mxu0 %v1912_v44  ;;  %1782 = vmatprep.subr.bf16.mxu1 %v1913_v38 }
 0x195   : > { %1755 = vmatpush3.bf16.msra.mxu0 %v1914_v39  ;;  %1783 = vmatpush3.bf16.msra.mxu1 %v1915_v40 }
 0x196   : > { %1756 = vmatprep.subr.bf16.mxu0 %v1916_v59  ;;  %1784 = vmatprep.subr.bf16.mxu1 %v1917_v20 }
 0x199   : > { %1757 = vmatpush3.bf16.msra.mxu0 %v1918_v41  ;;  %1785 = vmatpush3.bf16.msra.mxu1 %v1919_v9 }
 0x19a   : > { %1758 = vmatprep.subr.bf16.mxu0 %v1920_v42  ;;  %1786 = vmatprep.subr.bf16.mxu1 %v1921_v45 }
 0x19d   : > { %1759 = vmatpush3.bf16.msra.mxu0 %v1922_v12  ;;  %1787 = vmatpush3.bf16.msra.mxu1 %v1923_v1 }
 0x23f   : > { %v893_v6 = vpop.f32.mrf.mxu0  ;;  %v1130_v51 = vpop.f32.mrf.mxu1 }
 0x240   : > { %v894_v54 = vadd.f32 %v893_v6, %v772_v11  ;;  %v2574_v53 = vadd.f32 %v1130_v51, %v1009_v50 }
 0x241   : > { %v895_v2 = vpop.f32.mrf.mxu0  ;;  %v1132_v4 = vpop.f32.mrf.mxu1 }
 0x242   : > { %v920_v55 = vmul.f32 0.70710677, %v894_v54  ;;  %v1157_v5 = vmul.f32 0.70710677, %v2574_v53  ;;  %v896_v25 = vadd.f32 %v895_v2, %v776_v52  ;;  %v2577_v57 = vadd.f32 %v1132_v4, %v1013_v49 }
 0x243   : > { %v897_v58 = vpop.f32.mrf.mxu0  ;;  %v1134_v61 = vpop.f32.mrf.mxu1  ;;  %v912_v41 = vmul.f32 0.5, %v894_v54 }
 0x244   : > { %v898_v3 = vadd.f32 %v897_v58, %v772_v11  ;;  %v1135_v62 = vadd.f32 %v1134_v61, %v1009_v50  ;;  %1932 = verf.f32 %v920_v55  ;;  %v921_v63 = vmul.f32 0.70710677, %v896_v25 }
 0x245   : > { %v899_v0 = vpop.f32.mrf.mxu0  ;;  %v1136_v60 = vpop.f32.mrf.mxu1  ;;  %1934 = verf.f32 %v1157_v5  ;;  %v1158_v18 = vmul.f32 0.70710677, %v2577_v57  ;;  %v913_v42 = vmul.f32 0.5, %v896_v25  ;;  %v1150_v4 = vmul.f32 0.5, %v2577_v57 }
 0x246   : > { %v922_v21 = vmul.f32 0.70710677, %v898_v3  ;;  %1936 = verf.f32 %v921_v63  ;;  %v1159_v17 = vmul.f32 0.70710677, %v1135_v62  ;;  %v900_v30 = vadd.f32 %v899_v0, %v776_v52 }
 0x247   : > { %v1137_v27 = vadd.f32 %v1136_v60, %v1013_v49  ;;  %1938 = verf.f32 %v1158_v18  ;;  %v914_v45 = vmul.f32 0.5, %v898_v3  ;;  %v1151_v46 = vmul.f32 0.5, %v1135_v62 }
 0x248   : > { %1940 = verf.f32 %v922_v21  ;;  %v923_v16 = vmul.f32 0.70710677, %v900_v30  ;;  %v915_v54 = vmul.f32 0.5, %v900_v30  ;;  %v1149_v58 = vmul.f32 0.5, %v2574_v53 }
 0x249   : > { %1942 = verf.f32 %v1159_v17  ;;  %v1160_v19 = vmul.f32 0.70710677, %v1137_v27  ;;  %v1152_v5 = vmul.f32 0.5, %v1137_v27 }
 0x24a   : > { %1944 = verf.f32 %v923_v16 }
 0x24b   : > { %v903_v22 = vpop.f32.mrf.mxu0  ;;  %v1140_v15 = vpop.f32.mrf.mxu1  ;;  %1946 = verf.f32 %v1160_v19 }
 0x24c   : > { %v2580_v23 = vadd.f32 %v903_v22, %v772_v11  ;;  %v2582_v10 = vadd.f32 %v1140_v15, %v1009_v50 }
 0x24d   : > { %v905_v24 = vpop.f32.mrf.mxu0  ;;  %v1142_v7 = vpop.f32.mrf.mxu1 }
 0x24e   : > { %v924_v26 = vmul.f32 0.70710677, %v2580_v23  ;;  %v1161_v8 = vmul.f32 0.70710677, %v2582_v10  ;;  %v2586_v35 = vadd.f32 %v905_v24, %v776_v52  ;;  %v2588_v43 = vadd.f32 %v1142_v7, %v1013_v49 }
 0x24f   : > { %v907_v28 = vpop.f32.mrf.mxu0  ;;  %v1144_v29 = vpop.f32.mrf.mxu1  ;;  %v916_v7 = vmul.f32 0.5, %v2580_v23 }
 0x250   : > { %v2590_v32 = vadd.f32 %v907_v28, %v772_v11  ;;  %v2592_v33 = vadd.f32 %v1144_v29, %v1009_v50  ;;  %1948 = verf.f32 %v924_v26  ;;  %v925_v36 = vmul.f32 0.70710677, %v2586_v35 }
 0x251   : > { %v909_v31 = vpop.f32.mrf.mxu0  ;;  %v1146_v37 = vpop.f32.mrf.mxu1  ;;  %1950 = verf.f32 %v1161_v8  ;;  %v1162_v56 = vmul.f32 0.70710677, %v2588_v43 }
 0x252   : > { %v1933_v48 = vpop.eup %1932  ;;  %v926_v13 = vmul.f32 0.70710677, %v2590_v32  ;;  %1952 = verf.f32 %v925_v36  ;;  %v1163_v38 = vmul.f32 0.70710677, %v2592_v33  ;;  %v910_v40 = vadd.f32 %v909_v31, %v776_v52 }
 0x253   : > { %v1935_v44 = vpop.eup %1934  ;;  %1954 = verf.f32 %v1162_v56  ;;  %v2598_v59 = vadd.f32 %v1146_v37, %v1013_v49  ;;  %v936_v50 = vadd.f32 1.0, %v1933_v48  ;;  %v917_v36 = vmul.f32 0.5, %v2586_v35 }
 0x254   : > { %v1937_v39 = vpop.eup %1936  ;;  %1956 = verf.f32 %v926_v13  ;;  %v927_v12 = vmul.f32 0.70710677, %v910_v40  ;;  %v1173_v49 = vadd.f32 1.0, %v1935_v44  ;;  %v918_v37 = vmul.f32 0.5, %v2590_v32 }
 0x255   : > { %v1939_v20 = vpop.eup %1938  ;;  %1958 = verf.f32 %v1163_v38  ;;  %v937_v14 = vadd.f32 1.0, %v1937_v39  ;;  %v1164_v47 = vmul.f32 0.70710677, %v2598_v59  ;;  %v944_v63 = vmul.f32 %v936_v50, %v912_v41 }
 0x256   : > { %v1941_v9 = vpop.eup %1940  ;;  %v1174_v6 = vadd.f32 1.0, %v1939_v20  ;;  %1960 = verf.f32 %v927_v12  ;;  %v1181_v18 = vmul.f32 %v1173_v49, %v1149_v58  ;;  %v1155_v13 = vmul.f32 0.5, %v2592_v33 }
 0x257   : > { %v1943_v1 = vpop.eup %1942  ;;  %v938_v34 = vadd.f32 1.0, %v1941_v9  ;;  %1962 = verf.f32 %v1164_v47  ;;  %v945_v61 = vmul.f32 %v937_v14, %v913_v42  ;;  %v919_v44 = vmul.f32 0.5, %v910_v40 }
 0x258   : > { %v1945_v11 = vpop.eup %1944  ;;  %v1175_v51 = vadd.f32 1.0, %v1943_v1  ;;  %v1182_v0 = vmul.f32 %v1174_v6, %v1150_v4  ;;  %v1154_v39 = vmul.f32 0.5, %v2588_v43  ;;  %v1156_v23 = vmul.f32 0.5, %v2598_v59 }
 0x259   : > { %v1947_v52 = vpop.eup %1946  ;;  %v939_v2 = vadd.f32 1.0, %v1945_v11  ;;  %v946_v55 = vmul.f32 %v938_v34, %v914_v45  ;;  %v1153_v9 = vmul.f32 0.5, %v2582_v10 }
 0x25a   : > { %v1176_v25 = vadd.f32 1.0, %v1947_v52  ;;  %v1183_v3 = vmul.f32 %v1175_v51, %v1151_v46  ;;  %v1740_v51 = vld [vmem:[%s2660_s9] ss:$0 sm:$0xff] }
 0x25b   : > { %v947_v62 = vmul.f32 %v939_v2, %v915_v54  ;;  %v952_v16 = vpack.c.bf16 %v946_v55, %v944_v63  ;;  %v1741_v2 = vld [vmem:[%s2661_s10] ss:$0 sm:$0xff] }
 0x25c   : > { %v1184_v60 = vmul.f32 %v1176_v25, %v1152_v5  ;;  %v1189_v22 = vpack.c.bf16 %v1183_v3, %v1181_v18 }
 0x25d   : > { %v953_v21 = vpack.c.bf16 %v947_v62, %v945_v61  ;;  %v1949_v17 = vpop.eup %1948 }
 0x25e   : > { %v1190_v30 = vpack.c.bf16 %v1184_v60, %v1182_v0  ;;  %v1951_v19 = vpop.eup %1950  ;;  %v940_v29 = vadd.f32 1.0, %v1949_v17  ;;  %v1964_v0 = vld [vmem:[%s2157_s17] sm:$0xff] }
 0x25f   : > { %1498 = vmatprep.mubr.bf16.mxu1 %v953_v21  ;;  %v1953_v57 = vpop.eup %1952  ;;  %v1177_v56 = vadd.f32 1.0, %v1951_v19 }
 0x260   : > { %1353 = vmatprep.mubr.bf16.mxu0 %v1190_v30  ;;  %1499 = vmatmul.mubr.bf16.vlgmr.msra.gmra.mxu1 %v952_v16  ;;  %v1955_v27 = vpop.eup %1954  ;;  %v941_v26 = vadd.f32 1.0, %v1953_v57  ;;  %v948_v12 = vmul.f32 %v940_v29, %v916_v7 }
 0x261   : > { %1354 = vmatmul.mubr.bf16.vlgmr.msra.gmra.mxu0 %v1189_v22  ;;  %v1957_v53 = vpop.eup %1956  ;;  %v1178_v31 = vadd.f32 1.0, %v1955_v27  ;;  %v1185_v14 = vmul.f32 %v1177_v56, %v1153_v9 }
 0x262   : > { %v1959_v15 = vpop.eup %1958  ;;  %v942_v24 = vadd.f32 1.0, %v1957_v53  ;;  %v949_v42 = vmul.f32 %v941_v26, %v917_v36 }
 0x263   : > { %v1179_v8 = vadd.f32 1.0, %v1959_v15  ;;  %v1961_v28 = vpop.eup %1960  ;;  %v1186_v32 = vmul.f32 %v1178_v31, %v1154_v39  ;;  %v1965_v15 = vld [vmem:[%s2157_s17 + $0x8] sm:$0xff] }
 0x264   : > { %v1963_v48 = vpop.eup %1962  ;;  %v943_v38 = vadd.f32 1.0, %v1961_v28  ;;  %v950_v20 = vmul.f32 %v942_v24, %v918_v37 }
 0x265   : > { %v1180_v41 = vadd.f32 1.0, %v1963_v48  ;;  %v1187_v35 = vmul.f32 %v1179_v8, %v1155_v13 }
 0x266   : > { %v951_v45 = vmul.f32 %v943_v38, %v919_v44  ;;  %v954_v40 = vpack.c.bf16 %v950_v20, %v948_v12  ;;  %v1966_v38 = vld [vmem:[%s2157_s17 + $0x10] sm:$0xff] }
 0x267   : > { %v1188_v1 = vmul.f32 %v1180_v41, %v1156_v23  ;;  %v1191_v43 = vpack.c.bf16 %v1187_v35, %v1185_v14  ;;  %v1967_v41 = vld [vmem:[%s2157_s17 + $0x20] sm:$0xff] }
 0x268   : > { %v955_v34 = vpack.c.bf16 %v951_v45, %v949_v42  ;;  %v1968_v42 = vld [vmem:[%s2157_s17 + $0x18] sm:$0xff] }
 0x269   : > { %v1192_v33 = vpack.c.bf16 %v1188_v1, %v1186_v32 }
 0x26a   : > { %1506 = vmatprep.mubr.bf16.mxu1 %v955_v34 }
 0x26b   : > { %1361 = vmatprep.mubr.bf16.mxu0 %v1192_v33  ;;  %1507 = vmatmul.mubr.bf16.gmra.mxu1 %v954_v40 }
 0x26c   : > { %1362 = vmatmul.mubr.bf16.gmra.mxu0 %v1191_v43 }
 0x320   : > { %v1788_v10 = vpop.f32.mrf.mxu1 }
 0x321   : > { %v1760_v59 = vpop.f32.mrf.mxu0 }
 0x322   : > { %v1789_v46 = vpop.f32.mrf.mxu1 }
 0x323   : > { %v1761_v47 = vpop.f32.mrf.mxu0  ;;  %v1790_v11 = vadd.f32 %v1789_v46, %v1788_v10 }
 0x324   : > { %v1762_v50 = vadd.f32 %v1761_v47, %v1760_v59  ;;  %v1791_v6 = vpop.f32.mrf.mxu1 }
 0x325   : > { %v1763_v52 = vpop.f32.mrf.mxu0 }
 0x326   : > { %v1501_v49 = vadd.f32 %v1790_v11, %v1762_v50  ;;  %v1792_v54 = vpop.f32.mrf.mxu1 }
 0x327   : > { %v1764_v4 = vpop.f32.mrf.mxu0  ;;  %v1793_v55 = vadd.f32 %v1792_v54, %v1791_v6 }
 0x328   : > { %v1522_v5 = vadd.f32 %v1740_v51, %v1501_v49  ;;  %v1765_v25 = vadd.f32 %v1764_v4, %v1763_v52 }
 0x32a   : > { %v1533_v58 = vmul.f32 %v1741_v2, %v1522_v5  ;;  %v1504_v61 = vadd.f32 %v1793_v55, %v1765_v25 }
 0x32b   : > { %v1794_v63 = vpop.f32.mrf.mxu1 }
 0x32c   : > { %v1541_v3 = vrot.slane %v1533_v58, 4  ;;  %v1523_v62 = vadd.f32 %v1740_v51, %v1504_v61  ;;  %v1766_v21 = vpop.f32.mrf.mxu0 }
 0x32d   : > { %v1795_v17 = vpop.f32.mrf.mxu1 }
 0x32e   : > { %v1553_v60 = vadd.f32 %v1964_v0, %v1541_v3  ;;  %v1534_v18 = vmul.f32 %v1741_v2, %v1523_v62  ;;  %v1767_v30 = vpop.f32.mrf.mxu0  ;;  %v1796_v19 = vadd.f32 %v1795_v17, %v1794_v63 }
 0x32f   : > { %v1768_v22 = vadd.f32 %v1767_v30, %v1766_v21  ;;  %v1797_v57 = vpop.f32.mrf.mxu1 }
 0x330   : > { %1558 = vst [vmem:[%s2621_s23 - $0x4] sm:$0xf0] %v1553_v60  ;;  %v1542_v16 = vrot.slane %v1534_v18, 4  ;;  %v1769_v53 = vpop.f32.mrf.mxu0 }
 0x331   : > { %v1509_v7 = vadd.f32 %v1796_v19, %v1768_v22  ;;  %v1798_v26 = vpop.f32.mrf.mxu1 }
 0x332   : > { %v1543_v27 = vsel %vm553_vm3, %v1541_v3, %v1542_v16  ;;  %v1770_v8 = vpop.f32.mrf.mxu0  ;;  %v1799_v28 = vadd.f32 %v1798_v26, %v1797_v57 }
 0x333   : > { %v1554_v24 = vadd.f32 %v1965_v15, %v1543_v27  ;;  %v1524_v29 = vadd.f32 %v1740_v51, %v1509_v7  ;;  %v1771_v36 = vadd.f32 %v1770_v8, %v1769_v53 }
 0x335   : > { %1559 = vst [vmem:[%s2621_s23 + $0x4] sm:$0xff] %v1554_v24  ;;  %v1535_v31 = vmul.f32 %v1741_v2, %v1524_v29  ;;  %v1512_v37 = vadd.f32 %v1799_v28, %v1771_v36 }
 0x337   : > { %v1544_v48 = vrot.slane %v1535_v31, 4  ;;  %v1525_v56 = vadd.f32 %v1740_v51, %v1512_v37 }
 0x339   : > { %v1545_v13 = vsel %vm553_vm3, %v1542_v16, %v1544_v48  ;;  %v1536_v44 = vmul.f32 %v1741_v2, %v1525_v56 }
 0x33a   : > { %v1555_v39 = vadd.f32 %v1966_v38, %v1545_v13 }
 0x33b   : > { %v1546_v20 = vrot.slane %v1536_v44, 4 }
 0x33c   : > { %1560 = vst [vmem:[%s2621_s23 + $0xc] sm:$0xff] %v1555_v39 }
 0x33d   : > { %v1547_v23 = vsel %vm553_vm3, %v1544_v48, %v1546_v20  ;;  %v1557_v9 = vadd.f32 %v1967_v41, %v1546_v20 }
 0x33e   : > { %v1556_v35 = vadd.f32 %v1968_v42, %v1547_v23 }
 0x33f   : > { %1562 = vst [vmem:[%s2621_s23 + $0x1c] sm:$0xf] %v1557_v9 }
 0x340   : > { %1561 = vst [vmem:[%s2621_s23 + $0x14] sm:$0xff] %v1556_v35 }
 0x341 PF: > { %s27_s25 = sadd.s32 1, %s2021_s25   ;;  %s2663_s22 = smov %s2013_s24 }
 0x342   : > { %p24_p13 = scmp.ge.s32.totalorder %s27_s25, 6   ;;  %s2664_s23 = smov %s2017_s0 }
 0x343   : > { %s2665_s24 = smov %s2668_s26  ;;  %s2666_s0 = smov %s2672_s27 }
 0x344   :  { %26 = sbr.rel (!%p24_p13) target bundleno = 18 (0x12), region = 90 }

</bundles_post_ra>
